<compile_context>
chip_gen: v7x
topology: tpu7x:2x2x1
jax: 0.10.0
libtpu: 0.0.40
codegen_flags: <defaults>
</compile_context>

<pallas_src>
import math
import functools

import jax
import jax.numpy as jnp
from jax.experimental import pallas as pl
from jax.experimental.pallas import tpu as pltpu


# ----------------------------- kernel helpers -----------------------------

def _layer_norm(x, gamma, beta, eps=1e-5):
    # x: [M, D], gamma/beta: [1, D]; PyTorch LayerNorm (biased variance).
    mu = jnp.mean(x, axis=-1, keepdims=True)
    var = jnp.mean((x - mu) ** 2, axis=-1, keepdims=True)
    return (x - mu) * jax.lax.rsqrt(var + eps) * gamma + beta


def _mha_folded(q_in, kv_in, fused_qkv, wqkv, bqkv, wo, bo, *, nhead, bc, cdt):
    """Multi-head attention with batch folded into rows.

    q_in:  [bc*Tq, D]   kv_in: [bc*Tk, D]   (already in matmul dtype cdt)
    wqkv:  [D, 3D] (Q columns pre-scaled by 1/sqrt(hd))   bqkv: [1, 3D]
    wo:    [D, D]   bo: [1, D]
    fused_qkv: True for self-attention (q_in is kv_in) -> single projection.
    """
    D = wo.shape[0]
    hd = D // nhead
    mq = q_in.shape[0] // bc
    mk = kv_in.shape[0] // bc

    if fused_qkv:
        # One MXU push with N = 3D.
        qkv = jnp.dot(q_in, wqkv, preferred_element_type=jnp.float32) + bqkv
        q, k, v = qkv[:, :D], qkv[:, D:2 * D], qkv[:, 2 * D:]
    else:
        q = jnp.dot(q_in, wqkv[:, :D],
                    preferred_element_type=jnp.float32) + bqkv[:, :D]
        kv = jnp.dot(kv_in, wqkv[:, D:],
                     preferred_element_type=jnp.float32) + bqkv[:, D:]
        k, v = kv[:, :D], kv[:, D:]

    # Split heads with a single batched relayout per tensor; fold (bc, H) into
    # one batch dim so the score / AV contractions are single batched einsums.
    def split_heads(t, m):
        t = pltpu.einshape("bmhd->bhmd", t.reshape(bc, m, nhead, hd))
        return t.reshape(bc * nhead, m, hd)

    qh = split_heads(q.astype(cdt), mq)          # [bc*H, Tq, hd]
    kh = split_heads(k.astype(cdt), mk)          # [bc*H, Tk, hd]
    vh = split_heads(v.astype(cdt), mk)          # [bc*H, Tk, hd]

    s = jnp.einsum("hqd,hkd->hqk", qh, kh,
                   preferred_element_type=jnp.float32)     # [bc*H, Tq, Tk]
    s = s - jnp.max(s, axis=-1, keepdims=True)
    p = jnp.exp(s)
    inv = pl.reciprocal(jnp.sum(p, axis=-1, keepdims=True), approx=True)
    p = (p * inv).astype(cdt)

    o = jnp.einsum("hqk,hkd->hqd", p, vh,
                   preferred_element_type=jnp.float32)     # [bc*H, Tq, hd]
    o = pltpu.einshape("bhmd->bmhd", o.reshape(bc, nhead, mq, hd))
    o = o.reshape(bc * mq, D)                              # [bc*Tq, D]

    return jnp.dot(o.astype(cdt), wo, preferred_element_type=jnp.float32) + bo


# ------------------------------ fused kernel ------------------------------

def decoder_layer_kernel(
    tgt_ref, mem_ref,                     # activations
    sa_wqkv_ref, sa_wo_ref,               # self-attention weights
    ca_wqkv_ref, ca_wo_ref,               # cross-attention weights
    w1_ref, w2_ref,                       # feed-forward weights
    vecs_ref,                             # packed biases / LayerNorm params
    out_ref,                              # [BC, T, D] output block
    *, nhead, bc, tq, tk,
):
    D = sa_wo_ref.shape[0]
    ff = w1_ref.shape[1]
    cdt = w1_ref.dtype                    # matmul operand dtype (f32 or bf16)

    # Unpack the packed bias / LayerNorm table (each row is [1, width]).
    b_sa_qkv = vecs_ref[0:1, :3 * D]
    b_ca_qkv = vecs_ref[1:2, :3 * D]
    b_sa_o = vecs_ref[2:3, :D]
    b_ca_o = vecs_ref[3:4, :D]
    b1 = vecs_ref[4:5, :ff]
    b2 = vecs_ref[5:6, :D]
    g1, be1 = vecs_ref[6:7, :D], vecs_ref[7:8, :D]
    g2, be2 = vecs_ref[8:9, :D], vecs_ref[9:10, :D]
    g3, be3 = vecs_ref[10:11, :D], vecs_ref[11:12, :D]

    # Fold batch into the matmul M dimension.
    x = tgt_ref[...].reshape(bc * tq, D).astype(jnp.float32)      # [bc*T, D]
    mem = mem_ref[...].reshape(bc * tk, D).astype(jnp.float32)    # [bc*S, D]

    # ---- self attention + residual + norm1 ----
    x_c = x.astype(cdt)                      # hoisted single cast per stage
    sa = _mha_folded(x_c, x_c, True, sa_wqkv_ref[...], b_sa_qkv,
                     sa_wo_ref[...], b_sa_o, nhead=nhead, bc=bc, cdt=cdt)
    x = _layer_norm(x + sa, g1, be1)

    # ---- cross attention (memory) + residual + norm2 ----
    x_c = x.astype(cdt)
    mem_c = mem.astype(cdt)
    ca = _mha_folded(x_c, mem_c, False, ca_wqkv_ref[...], b_ca_qkv,
                     ca_wo_ref[...], b_ca_o, nhead=nhead, bc=bc, cdt=cdt)
    x = _layer_norm(x + ca, g2, be2)

    # ---- feed-forward (linear1 -> relu -> linear2) + residual + norm3 ----
    x_c = x.astype(cdt)
    h = jnp.dot(x_c, w1_ref[...], preferred_element_type=jnp.float32) + b1
    h = jnp.maximum(h, 0.0)
    y = jnp.dot(h.astype(cdt), w2_ref[...],
                preferred_element_type=jnp.float32) + b2
    x = _layer_norm(x + y, g3, be3)

    # Plain [BC, T, D] write (last two dims satisfy the (8,128)/full-dim rule).
    out_ref[...] = x.reshape(bc, tq, D).astype(out_ref.dtype)


# ------------------------------ wrapper ------------------------------

def _tensorcores_per_device():
    """Megacore chips (v7x / v4 / v5p) have 2 TensorCores; v5e/v6e have 1."""
    try:
        kind = jax.devices()[0].device_kind.lower()
    except Exception:
        return 1
    if "v7" in kind or "v4" in kind or "v5p" in kind:
        return 2
    return 1


def transformer_decoder_layer(tgt, memory, params, nhead, use_bf16=False):
    """tgt: [tgt_len, B, D], memory: [src_len, B, D]  (PyTorch layout)."""
    T, B, D = tgt.shape
    S = memory.shape[0]
    ff = params["w1"].shape[1]
    assert D % nhead == 0
    hd = D // nhead

    # ---- host-side parameter prep ----
    # Fold 1/sqrt(hd) attention scale into the Q projection weights & bias.
    q_scale = 1.0 / math.sqrt(hd)

    def scale_q(wqkv, bqkv):
        w = jnp.concatenate([wqkv[:, :D] * q_scale, wqkv[:, D:]], axis=1)
        b = jnp.concatenate([bqkv[:, :D] * q_scale, bqkv[:, D:]], axis=1)
        return w, b

    sa_wqkv, sa_bqkv = scale_q(params["sa_wqkv"], params["sa_bqkv"])
    ca_wqkv, ca_bqkv = scale_q(params["ca_wqkv"], params["ca_bqkv"])

    # Pack the 12 tiny bias / LayerNorm vectors into one [16, Wp] array
    # (lane width padded to a multiple of 128, rows padded to 16 -> every
    # in-kernel slice is a full-lane aligned load).
    W = max(3 * D, ff)
    Wp = ((W + 127) // 128) * 128

    def pad_row(v):
        return jnp.pad(v, ((0, 0), (0, Wp - v.shape[1])))

    rows = [
        pad_row(sa_bqkv), pad_row(ca_bqkv),
        pad_row(params["sa_bo"]), pad_row(params["ca_bo"]),
        pad_row(params["b1"]), pad_row(params["b2"]),
        pad_row(params["g1"]), pad_row(params["be1"]),
        pad_row(params["g2"]), pad_row(params["be2"]),
        pad_row(params["g3"]), pad_row(params["be3"]),
    ]
    vecs = jnp.concatenate(
        rows + [jnp.zeros((16 - len(rows), Wp), jnp.float32)],
        axis=0).astype(jnp.float32)                     # [16, Wp]

    # bf16 matmul operands are the right default on bf16-native MXUs
    # (v6e/v7x) once shapes grow; kept opt-in here so the f32 reference
    # check stays tight.
    wdt = jnp.bfloat16 if use_bf16 else jnp.float32
    mats = tuple(m.astype(wdt) for m in (
        sa_wqkv, params["sa_wo"], ca_wqkv, params["ca_wo"],
        params["w1"], params["w2"]))

    # ---- grid: fold the whole batch unless each core gets a big M ----
    ncores = _tensorcores_per_device()
    G = 1
    if ncores > 1 and B % ncores == 0 and (B // ncores) * T >= 128:
        G = ncores
    BC = B // G

    tgt_b = jnp.transpose(tgt, (1, 0, 2))              # [B, T, D]
    mem_b = jnp.transpose(memory, (1, 0, 2))           # [B, S, D]

    def full_spec(arr):
        nd = arr.ndim
        return pl.BlockSpec(arr.shape, lambda g, _nd=nd: (0,) * _nd)

    in_specs = [
        pl.BlockSpec((BC, T, D), lambda g: (g, 0, 0)),     # tgt
        pl.BlockSpec((BC, S, D), lambda g: (g, 0, 0)),     # memory
    ] + [full_spec(m) for m in mats] + [full_spec(vecs)]

    out_spec = pl.BlockSpec((BC, T, D), lambda g: (g, 0, 0))

    # Advisory cost estimate for XLA scheduling.
    flops = 2 * B * (
        T * D * 3 * D                      # self QKV
        + 2 * T * T * D                    # self scores + AV
        + T * D * D                        # self out proj
        + T * D * D + S * D * 2 * D        # cross Q + KV
        + 2 * T * S * D                    # cross scores + AV
        + T * D * D                        # cross out proj
        + 2 * T * D * ff                   # FFN
    )
    transcendentals = B * nhead * (T * T + T * S) + 3 * B * T
    wsize = jnp.dtype(wdt).itemsize
    bytes_accessed = 4 * (tgt_b.size + mem_b.size + vecs.size + B * T * D) \
        + wsize * sum(int(m.size) for m in mats)

    kernel = functools.partial(decoder_layer_kernel,
                               nhead=nhead, bc=BC, tq=T, tk=S)
    fn = pl.pallas_call(
        kernel,
        out_shape=jax.ShapeDtypeStruct((B, T, D), tgt.dtype),
        grid=(G,),
        in_specs=in_specs,
        out_specs=out_spec,
        compiler_params=pltpu.CompilerParams(
            dimension_semantics=("parallel",),
            vmem_limit_bytes=32 * 1024 * 1024),
        cost_estimate=pl.CostEstimate(
            flops=flops, transcendentals=transcendentals,
            bytes_accessed=bytes_accessed),
    )
    out_b = fn(tgt_b, mem_b, *mats, vecs)              # [B, T, D]
    return jnp.transpose(out_b, (1, 0, 2))             # [T, B, D]


# ------------------------- pure-JAX reference -------------------------

def _reference(tgt, memory, params, nhead):
    def ln(x, g, b):
        mu = jnp.mean(x, -1, keepdims=True)
        var = jnp.mean((x - mu) ** 2, -1, keepdims=True)
        return (x - mu) / jnp.sqrt(var + 1e-5) * g[0] + b[0]

    def mha(q_in, kv_in, wqkv, bqkv, wo, bo):
        D = q_in.shape[-1]
        hd = D // nhead
        q = q_in @ wqkv[:, :D] + bqkv[0, :D]
        k = kv_in @ wqkv[:, D:2 * D] + bqkv[0, D:2 * D]
        v = kv_in @ wqkv[:, 2 * D:] + bqkv[0, 2 * D:]
        outs = []
        for h in range(nhead):
            qh = q[..., :, h * hd:(h + 1) * hd] / math.sqrt(hd)
            kh = k[..., :, h * hd:(h + 1) * hd]
            vh = v[..., :, h * hd:(h + 1) * hd]
            s = jnp.einsum("bqd,bkd->bqk", qh, kh)
            p = jax.nn.softmax(s, axis=-1)
            outs.append(jnp.einsum("bqk,bkd->bqd", p, vh))
        return jnp.concatenate(outs, -1) @ wo + bo[0]

    x = jnp.transpose(tgt, (1, 0, 2))
    mem = jnp.transpose(memory, (1, 0, 2))
    x = ln(x + mha(x, x, params["sa_wqkv"], params["sa_bqkv"],
                   params["sa_wo"], params["sa_bo"]),
           params["g1"], params["be1"])
    x = ln(x + mha(x, mem, params["ca_wqkv"], params["ca_bqkv"],
                   params["ca_wo"], params["ca_bo"]),
           params["g2"], params["be2"])
    h = jnp.maximum(x @ params["w1"] + params["b1"][0], 0.0)
    x = ln(x + h @ params["w2"] + params["b2"][0], params["g3"], params["be3"])
    return jnp.transpose(x, (1, 0, 2))


# ------------------------------- main -------------------------------

if __name__ == "__main__":
    d_model = 32
    nhead = 4
    dim_feedforward = 64
    tgt_len, src_len, batch = 8, 8, 2

    key = jax.random.PRNGKey(0)
    ks = jax.random.split(key, 24)
    scale = 0.1

    params = {
        # attention in_proj weights stored pre-transposed as [D, 3D]
        "sa_wqkv": scale * jax.random.normal(ks[0], (d_model, 3 * d_model), jnp.float32),
        "sa_bqkv": scale * jax.random.normal(ks[1], (1, 3 * d_model), jnp.float32),
        "sa_wo":   scale * jax.random.normal(ks[2], (d_model, d_model), jnp.float32),
        "sa_bo":   scale * jax.random.normal(ks[3], (1, d_model), jnp.float32),
        "ca_wqkv": scale * jax.random.normal(ks[4], (d_model, 3 * d_model), jnp.float32),
        "ca_bqkv": scale * jax.random.normal(ks[5], (1, 3 * d_model), jnp.float32),
        "ca_wo":   scale * jax.random.normal(ks[6], (d_model, d_model), jnp.float32),
        "ca_bo":   scale * jax.random.normal(ks[7], (1, d_model), jnp.float32),
        # feed-forward, weights pre-transposed so y = x @ W + b
        "w1": scale * jax.random.normal(ks[8], (d_model, dim_feedforward), jnp.float32),
        "b1": scale * jax.random.normal(ks[9], (1, dim_feedforward), jnp.float32),
        "w2": scale * jax.random.normal(ks[10], (dim_feedforward, d_model), jnp.float32),
        "b2": scale * jax.random.normal(ks[11], (1, d_model), jnp.float32),
        # layer norms
        "g1":  jnp.ones((1, d_model), jnp.float32),
        "be1": jnp.zeros((1, d_model), jnp.float32),
        "g2":  jnp.ones((1, d_model), jnp.float32),
        "be2": jnp.zeros((1, d_model), jnp.float32),
        "g3":  jnp.ones((1, d_model), jnp.float32),
        "be3": jnp.zeros((1, d_model), jnp.float32),
    }

    tgt = jax.random.normal(ks[12], (tgt_len, batch, d_model), jnp.float32)
    memory = jax.random.normal(ks[13], (src_len, batch, d_model), jnp.float32)

    out = transformer_decoder_layer(tgt, memory, params, nhead)
    out = jax.block_until_ready(out)

    ref = _reference(tgt, memory, params, nhead)
    assert out.shape == (tgt_len, batch, d_model)
    # Tolerance slack covers the approximate EUP reciprocal in the softmax.
    assert jnp.allclose(out, ref, atol=5e-3, rtol=5e-3), "mismatch vs reference"

    print("KERNEL_OK")
</pallas_src>

<mosaic_0001>
module attributes {stable_mosaic.version = 11 : i64} {
  func.func @decoder_layer_kernel(%arg0: i32, %arg1: memref<2x8x32xf32, #tpu.memory_space<vmem>>, %arg2: memref<2x8x32xf32, #tpu.memory_space<vmem>>, %arg3: memref<32x96xf32, #tpu.memory_space<vmem>>, %arg4: memref<32x32xf32, #tpu.memory_space<vmem>>, %arg5: memref<32x96xf32, #tpu.memory_space<vmem>>, %arg6: memref<32x32xf32, #tpu.memory_space<vmem>>, %arg7: memref<32x64xf32, #tpu.memory_space<vmem>>, %arg8: memref<64x32xf32, #tpu.memory_space<vmem>>, %arg9: memref<16x128xf32, #tpu.memory_space<vmem>>, %arg10: memref<2x8x32xf32, #tpu.memory_space<vmem>>) attributes {dimension_semantics = [#tpu.dimension_semantics<parallel>], iteration_bounds = array<i64: 1>, scalar_prefetch = 0 : i64, scratch_operands = 0 : i64, tpu.core_type = #tpu.core_type<tc>, window_params = [{transform_indices = @transform_0, window_bounds = array<i64: 2, 8, 32>}, {transform_indices = @transform_1, window_bounds = array<i64: 2, 8, 32>}, {pipeline_mode = #tpu.pipeline_mode<synchronous>, transform_indices = @transform_2, window_bounds = array<i64: 32, 96>}, {pipeline_mode = #tpu.pipeline_mode<synchronous>, transform_indices = @transform_3, window_bounds = array<i64: 32, 32>}, {pipeline_mode = #tpu.pipeline_mode<synchronous>, transform_indices = @transform_4, window_bounds = array<i64: 32, 96>}, {pipeline_mode = #tpu.pipeline_mode<synchronous>, transform_indices = @transform_5, window_bounds = array<i64: 32, 32>}, {pipeline_mode = #tpu.pipeline_mode<synchronous>, transform_indices = @transform_6, window_bounds = array<i64: 32, 64>}, {pipeline_mode = #tpu.pipeline_mode<synchronous>, transform_indices = @transform_7, window_bounds = array<i64: 64, 32>}, {pipeline_mode = #tpu.pipeline_mode<synchronous>, transform_indices = @transform_8, window_bounds = array<i64: 16, 128>}, {transform_indices = @transform_9, window_bounds = array<i64: 2, 8, 32>}]} {
    %c0 = arith.constant 0 : index
    %c0_0 = arith.constant 0 : index
    %0 = vector.load %arg9[%c0, %c0_0] : memref<16x128xf32, #tpu.memory_space<vmem>>, vector<1x96xf32>
    %c1 = arith.constant 1 : index
    %c0_1 = arith.constant 0 : index
    %1 = vector.load %arg9[%c1, %c0_1] : memref<16x128xf32, #tpu.memory_space<vmem>>, vector<1x96xf32>
    %c2 = arith.constant 2 : index
    %c0_2 = arith.constant 0 : index
    %2 = vector.load %arg9[%c2, %c0_2] : memref<16x128xf32, #tpu.memory_space<vmem>>, vector<1x32xf32>
    %c3 = arith.constant 3 : index
    %c0_3 = arith.constant 0 : index
    %3 = vector.load %arg9[%c3, %c0_3] : memref<16x128xf32, #tpu.memory_space<vmem>>, vector<1x32xf32>
    %c4 = arith.constant 4 : index
    %c0_4 = arith.constant 0 : index
    %4 = vector.load %arg9[%c4, %c0_4] : memref<16x128xf32, #tpu.memory_space<vmem>>, vector<1x64xf32>
    %c5 = arith.constant 5 : index
    %c0_5 = arith.constant 0 : index
    %5 = vector.load %arg9[%c5, %c0_5] : memref<16x128xf32, #tpu.memory_space<vmem>>, vector<1x32xf32>
    %c6 = arith.constant 6 : index
    %c0_6 = arith.constant 0 : index
    %6 = vector.load %arg9[%c6, %c0_6] : memref<16x128xf32, #tpu.memory_space<vmem>>, vector<1x32xf32>
    %c7 = arith.constant 7 : index
    %c0_7 = arith.constant 0 : index
    %7 = vector.load %arg9[%c7, %c0_7] : memref<16x128xf32, #tpu.memory_space<vmem>>, vector<1x32xf32>
    %c8 = arith.constant 8 : index
    %c0_8 = arith.constant 0 : index
    %8 = vector.load %arg9[%c8, %c0_8] : memref<16x128xf32, #tpu.memory_space<vmem>>, vector<1x32xf32>
    %c9 = arith.constant 9 : index
    %c0_9 = arith.constant 0 : index
    %9 = vector.load %arg9[%c9, %c0_9] : memref<16x128xf32, #tpu.memory_space<vmem>>, vector<1x32xf32>
    %c10 = arith.constant 10 : index
    %c0_10 = arith.constant 0 : index
    %10 = vector.load %arg9[%c10, %c0_10] : memref<16x128xf32, #tpu.memory_space<vmem>>, vector<1x32xf32>
    %c11 = arith.constant 11 : index
    %c0_11 = arith.constant 0 : index
    %11 = vector.load %arg9[%c11, %c0_11] : memref<16x128xf32, #tpu.memory_space<vmem>>, vector<1x32xf32>
    %c0_12 = arith.constant 0 : index
    %c0_13 = arith.constant 0 : index
    %c0_14 = arith.constant 0 : index
    %12 = vector.load %arg1[%c0_12, %c0_13, %c0_14] : memref<2x8x32xf32, #tpu.memory_space<vmem>>, vector<2x8x32xf32>
    %13 = vector.shape_cast %12 : vector<2x8x32xf32> to vector<16x32xf32>
    %c0_15 = arith.constant 0 : index
    %c0_16 = arith.constant 0 : index
    %c0_17 = arith.constant 0 : index
    %14 = vector.load %arg2[%c0_15, %c0_16, %c0_17] : memref<2x8x32xf32, #tpu.memory_space<vmem>>, vector<2x8x32xf32>
    %15 = vector.shape_cast %14 : vector<2x8x32xf32> to vector<16x32xf32>
    %c0_18 = arith.constant 0 : index
    %c0_19 = arith.constant 0 : index
    %16 = vector.load %arg3[%c0_18, %c0_19] : memref<32x96xf32, #tpu.memory_space<vmem>>, vector<32x96xf32>
    %c0_20 = arith.constant 0 : index
    %c0_21 = arith.constant 0 : index
    %17 = vector.load %arg4[%c0_20, %c0_21] : memref<32x32xf32, #tpu.memory_space<vmem>>, vector<32x32xf32>
    %cst = arith.constant dense<0.000000e+00> : vector<16x96xf32>
    %18 = tpu.matmul %13, %16, %cst {dimension_numbers = #tpu.dot_dimension_numbers<[1], [0], [0], [1], [0, 0, 1, 1], [], []>} : vector<16x32xf32>, vector<32x96xf32>, vector<16x96xf32> -> vector<16x96xf32>
    %19 = vector.broadcast %0 : vector<1x96xf32> to vector<16x96xf32>
    %20 = arith.addf %18, %19 : vector<16x96xf32>
    %21 = vector.extract_strided_slice %20 {offsets = [0, 0], sizes = [16, 32], strides = [1, 1]} : vector<16x96xf32> to vector<16x32xf32>
    %22 = vector.extract_strided_slice %20 {offsets = [0, 32], sizes = [16, 32], strides = [1, 1]} : vector<16x96xf32> to vector<16x32xf32>
    %23 = vector.extract_strided_slice %20 {offsets = [0, 64], sizes = [16, 32], strides = [1, 1]} : vector<16x96xf32> to vector<16x32xf32>
    %24 = vector.shape_cast %21 : vector<16x32xf32> to vector<2x8x4x8xf32>
    %25 = tpu.transpose %24, [0, 2, 1, 3] : vector<2x8x4x8xf32> -> vector<2x4x8x8xf32>
    %26 = vector.shape_cast %25 : vector<2x4x8x8xf32> to vector<8x8x8xf32>
    %27 = vector.shape_cast %22 : vector<16x32xf32> to vector<2x8x4x8xf32>
    %28 = tpu.transpose %27, [0, 2, 1, 3] : vector<2x8x4x8xf32> -> vector<2x4x8x8xf32>
    %29 = vector.shape_cast %28 : vector<2x4x8x8xf32> to vector<8x8x8xf32>
    %30 = vector.shape_cast %23 : vector<16x32xf32> to vector<2x8x4x8xf32>
    %31 = tpu.transpose %30, [0, 2, 1, 3] : vector<2x8x4x8xf32> -> vector<2x4x8x8xf32>
    %32 = vector.shape_cast %31 : vector<2x4x8x8xf32> to vector<8x8x8xf32>
    "tpu.trace_start"() <{level = 10 : i32, message = "hqd,hkd->hqk"}> : () -> ()
    %cst_22 = arith.constant dense<0.000000e+00> : vector<8x8x8xf32>
    %33 = tpu.matmul %26, %29, %cst_22 {dimension_numbers = #tpu.dot_dimension_numbers<[2], [2], [1], [1], [0, 0, 0, 1, 1, 1], [0], [0]>} : vector<8x8x8xf32>, vector<8x8x8xf32>, vector<8x8x8xf32> -> vector<8x8x8xf32>
    "tpu.trace_stop"() : () -> ()
    %cst_23 = arith.constant dense<0xFF800000> : vector<8x8xf32>
    %34 = vector.multi_reduction <maximumf>, %33, %cst_23 [2] : vector<8x8x8xf32> to vector<8x8xf32>
    %35 = vector.shape_cast %34 : vector<8x8xf32> to vector<8x8x1xf32>
    %36 = vector.broadcast %35 : vector<8x8x1xf32> to vector<8x8x8xf32>
    %37 = arith.subf %33, %36 : vector<8x8x8xf32>
    %38 = math.exp %37 : vector<8x8x8xf32>
    %cst_24 = arith.constant dense<0.000000e+00> : vector<8x8xf32>
    %39 = vector.multi_reduction <add>, %38, %cst_24 [2] : vector<8x8x8xf32> to vector<8x8xf32>
    %40 = vector.shape_cast %39 : vector<8x8xf32> to vector<8x8x1xf32>
    %41 = tpu.reciprocal %40 {approx = true} : vector<8x8x1xf32> -> vector<8x8x1xf32>
    %42 = vector.broadcast %41 : vector<8x8x1xf32> to vector<8x8x8xf32>
    %43 = arith.mulf %38, %42 : vector<8x8x8xf32>
    "tpu.trace_start"() <{level = 10 : i32, message = "hqk,hkd->hqd"}> : () -> ()
    %cst_25 = arith.constant dense<0.000000e+00> : vector<8x8x8xf32>
    %44 = tpu.matmul %43, %32, %cst_25 {dimension_numbers = #tpu.dot_dimension_numbers<[2], [1], [1], [2], [0, 0, 0, 1, 1, 2], [0], [0]>} : vector<8x8x8xf32>, vector<8x8x8xf32>, vector<8x8x8xf32> -> vector<8x8x8xf32>
    "tpu.trace_stop"() : () -> ()
    %45 = vector.shape_cast %44 : vector<8x8x8xf32> to vector<2x4x8x8xf32>
    %46 = tpu.transpose %45, [0, 2, 1, 3] : vector<2x4x8x8xf32> -> vector<2x8x4x8xf32>
    %47 = vector.shape_cast %46 : vector<2x8x4x8xf32> to vector<16x32xf32>
    %cst_26 = arith.constant dense<0.000000e+00> : vector<16x32xf32>
    %48 = tpu.matmul %47, %17, %cst_26 {dimension_numbers = #tpu.dot_dimension_numbers<[1], [0], [0], [1], [0, 0, 1, 1], [], []>} : vector<16x32xf32>, vector<32x32xf32>, vector<16x32xf32> -> vector<16x32xf32>
    %49 = vector.broadcast %2 : vector<1x32xf32> to vector<16x32xf32>
    %50 = arith.addf %48, %49 : vector<16x32xf32>
    %51 = arith.addf %13, %50 : vector<16x32xf32>
    %cst_27 = arith.constant dense<0.000000e+00> : vector<16xf32>
    %52 = vector.multi_reduction <add>, %51, %cst_27 [1] : vector<16x32xf32> to vector<16xf32>
    %53 = vector.shape_cast %52 : vector<16xf32> to vector<16x1xf32>
    %cst_28 = arith.constant 3.200000e+01 : f32
    %54 = vector.broadcast %cst_28 : f32 to vector<16x1xf32>
    %55 = arith.divf %53, %54 : vector<16x1xf32>
    %56 = vector.broadcast %55 : vector<16x1xf32> to vector<16x32xf32>
    %57 = arith.subf %51, %56 : vector<16x32xf32>
    %58 = arith.mulf %57, %57 : vector<16x32xf32>
    %cst_29 = arith.constant dense<0.000000e+00> : vector<16xf32>
    %59 = vector.multi_reduction <add>, %58, %cst_29 [1] : vector<16x32xf32> to vector<16xf32>
    %60 = vector.shape_cast %59 : vector<16xf32> to vector<16x1xf32>
    %cst_30 = arith.constant 3.200000e+01 : f32
    %61 = vector.broadcast %cst_30 : f32 to vector<16x1xf32>
    %62 = arith.divf %60, %61 : vector<16x1xf32>
    %63 = vector.broadcast %55 : vector<16x1xf32> to vector<16x32xf32>
    %64 = arith.subf %51, %63 : vector<16x32xf32>
    %cst_31 = arith.constant 9.99999974E-6 : f32
    %65 = vector.broadcast %cst_31 : f32 to vector<16x1xf32>
    %66 = arith.addf %62, %65 : vector<16x1xf32>
    %67 = math.rsqrt %66 : vector<16x1xf32>
    %68 = vector.broadcast %67 : vector<16x1xf32> to vector<16x32xf32>
    %69 = arith.mulf %64, %68 : vector<16x32xf32>
    %70 = vector.broadcast %6 : vector<1x32xf32> to vector<16x32xf32>
    %71 = arith.mulf %69, %70 : vector<16x32xf32>
    %72 = vector.broadcast %7 : vector<1x32xf32> to vector<16x32xf32>
    %73 = arith.addf %71, %72 : vector<16x32xf32>
    %c0_32 = arith.constant 0 : index
    %c0_33 = arith.constant 0 : index
    %74 = vector.load %arg5[%c0_32, %c0_33] : memref<32x96xf32, #tpu.memory_space<vmem>>, vector<32x96xf32>
    %c0_34 = arith.constant 0 : index
    %c0_35 = arith.constant 0 : index
    %75 = vector.load %arg6[%c0_34, %c0_35] : memref<32x32xf32, #tpu.memory_space<vmem>>, vector<32x32xf32>
    %76 = vector.extract_strided_slice %74 {offsets = [0, 0], sizes = [32, 32], strides = [1, 1]} : vector<32x96xf32> to vector<32x32xf32>
    %cst_36 = arith.constant dense<0.000000e+00> : vector<16x32xf32>
    %77 = tpu.matmul %73, %76, %cst_36 {dimension_numbers = #tpu.dot_dimension_numbers<[1], [0], [0], [1], [0, 0, 1, 1], [], []>} : vector<16x32xf32>, vector<32x32xf32>, vector<16x32xf32> -> vector<16x32xf32>
    %78 = vector.extract_strided_slice %1 {offsets = [0, 0], sizes = [1, 32], strides = [1, 1]} : vector<1x96xf32> to vector<1x32xf32>
    %79 = vector.broadcast %78 : vector<1x32xf32> to vector<16x32xf32>
    %80 = arith.addf %77, %79 : vector<16x32xf32>
    %81 = vector.extract_strided_slice %74 {offsets = [0, 32], sizes = [32, 64], strides = [1, 1]} : vector<32x96xf32> to vector<32x64xf32>
    %cst_37 = arith.constant dense<0.000000e+00> : vector<16x64xf32>
    %82 = tpu.matmul %15, %81, %cst_37 {dimension_numbers = #tpu.dot_dimension_numbers<[1], [0], [0], [1], [0, 0, 1, 1], [], []>} : vector<16x32xf32>, vector<32x64xf32>, vector<16x64xf32> -> vector<16x64xf32>
    %83 = vector.extract_strided_slice %1 {offsets = [0, 32], sizes = [1, 64], strides = [1, 1]} : vector<1x96xf32> to vector<1x64xf32>
    %84 = vector.broadcast %83 : vector<1x64xf32> to vector<16x64xf32>
    %85 = arith.addf %82, %84 : vector<16x64xf32>
    %86 = vector.extract_strided_slice %85 {offsets = [0, 0], sizes = [16, 32], strides = [1, 1]} : vector<16x64xf32> to vector<16x32xf32>
    %87 = vector.extract_strided_slice %85 {offsets = [0, 32], sizes = [16, 32], strides = [1, 1]} : vector<16x64xf32> to vector<16x32xf32>
    %88 = vector.shape_cast %80 : vector<16x32xf32> to vector<2x8x4x8xf32>
    %89 = tpu.transpose %88, [0, 2, 1, 3] : vector<2x8x4x8xf32> -> vector<2x4x8x8xf32>
    %90 = vector.shape_cast %89 : vector<2x4x8x8xf32> to vector<8x8x8xf32>
    %91 = vector.shape_cast %86 : vector<16x32xf32> to vector<2x8x4x8xf32>
    %92 = tpu.transpose %91, [0, 2, 1, 3] : vector<2x8x4x8xf32> -> vector<2x4x8x8xf32>
    %93 = vector.shape_cast %92 : vector<2x4x8x8xf32> to vector<8x8x8xf32>
    %94 = vector.shape_cast %87 : vector<16x32xf32> to vector<2x8x4x8xf32>
    %95 = tpu.transpose %94, [0, 2, 1, 3] : vector<2x8x4x8xf32> -> vector<2x4x8x8xf32>
    %96 = vector.shape_cast %95 : vector<2x4x8x8xf32> to vector<8x8x8xf32>
    "tpu.trace_start"() <{level = 10 : i32, message = "hqd,hkd->hqk"}> : () -> ()
    %cst_38 = arith.constant dense<0.000000e+00> : vector<8x8x8xf32>
    %97 = tpu.matmul %90, %93, %cst_38 {dimension_numbers = #tpu.dot_dimension_numbers<[2], [2], [1], [1], [0, 0, 0, 1, 1, 1], [0], [0]>} : vector<8x8x8xf32>, vector<8x8x8xf32>, vector<8x8x8xf32> -> vector<8x8x8xf32>
    "tpu.trace_stop"() : () -> ()
    %cst_39 = arith.constant dense<0xFF800000> : vector<8x8xf32>
    %98 = vector.multi_reduction <maximumf>, %97, %cst_39 [2] : vector<8x8x8xf32> to vector<8x8xf32>
    %99 = vector.shape_cast %98 : vector<8x8xf32> to vector<8x8x1xf32>
    %100 = vector.broadcast %99 : vector<8x8x1xf32> to vector<8x8x8xf32>
    %101 = arith.subf %97, %100 : vector<8x8x8xf32>
    %102 = math.exp %101 : vector<8x8x8xf32>
    %cst_40 = arith.constant dense<0.000000e+00> : vector<8x8xf32>
    %103 = vector.multi_reduction <add>, %102, %cst_40 [2] : vector<8x8x8xf32> to vector<8x8xf32>
    %104 = vector.shape_cast %103 : vector<8x8xf32> to vector<8x8x1xf32>
    %105 = tpu.reciprocal %104 {approx = true} : vector<8x8x1xf32> -> vector<8x8x1xf32>
    %106 = vector.broadcast %105 : vector<8x8x1xf32> to vector<8x8x8xf32>
    %107 = arith.mulf %102, %106 : vector<8x8x8xf32>
    "tpu.trace_start"() <{level = 10 : i32, message = "hqk,hkd->hqd"}> : () -> ()
    %cst_41 = arith.constant dense<0.000000e+00> : vector<8x8x8xf32>
    %108 = tpu.matmul %107, %96, %cst_41 {dimension_numbers = #tpu.dot_dimension_numbers<[2], [1], [1], [2], [0, 0, 0, 1, 1, 2], [0], [0]>} : vector<8x8x8xf32>, vector<8x8x8xf32>, vector<8x8x8xf32> -> vector<8x8x8xf32>
    "tpu.trace_stop"() : () -> ()
    %109 = vector.shape_cast %108 : vector<8x8x8xf32> to vector<2x4x8x8xf32>
    %110 = tpu.transpose %109, [0, 2, 1, 3] : vector<2x4x8x8xf32> -> vector<2x8x4x8xf32>
    %111 = vector.shape_cast %110 : vector<2x8x4x8xf32> to vector<16x32xf32>
    %cst_42 = arith.constant dense<0.000000e+00> : vector<16x32xf32>
    %112 = tpu.matmul %111, %75, %cst_42 {dimension_numbers = #tpu.dot_dimension_numbers<[1], [0], [0], [1], [0, 0, 1, 1], [], []>} : vector<16x32xf32>, vector<32x32xf32>, vector<16x32xf32> -> vector<16x32xf32>
    %113 = vector.broadcast %3 : vector<1x32xf32> to vector<16x32xf32>
    %114 = arith.addf %112, %113 : vector<16x32xf32>
    %115 = arith.addf %73, %114 : vector<16x32xf32>
    %cst_43 = arith.constant dense<0.000000e+00> : vector<16xf32>
    %116 = vector.multi_reduction <add>, %115, %cst_43 [1] : vector<16x32xf32> to vector<16xf32>
    %117 = vector.shape_cast %116 : vector<16xf32> to vector<16x1xf32>
    %cst_44 = arith.constant 3.200000e+01 : f32
    %118 = vector.broadcast %cst_44 : f32 to vector<16x1xf32>
    %119 = arith.divf %117, %118 : vector<16x1xf32>
    %120 = vector.broadcast %119 : vector<16x1xf32> to vector<16x32xf32>
    %121 = arith.subf %115, %120 : vector<16x32xf32>
    %122 = arith.mulf %121, %121 : vector<16x32xf32>
    %cst_45 = arith.constant dense<0.000000e+00> : vector<16xf32>
    %123 = vector.multi_reduction <add>, %122, %cst_45 [1] : vector<16x32xf32> to vector<16xf32>
    %124 = vector.shape_cast %123 : vector<16xf32> to vector<16x1xf32>
    %cst_46 = arith.constant 3.200000e+01 : f32
    %125 = vector.broadcast %cst_46 : f32 to vector<16x1xf32>
    %126 = arith.divf %124, %125 : vector<16x1xf32>
    %127 = vector.broadcast %119 : vector<16x1xf32> to vector<16x32xf32>
    %128 = arith.subf %115, %127 : vector<16x32xf32>
    %cst_47 = arith.constant 9.99999974E-6 : f32
    %129 = vector.broadcast %cst_47 : f32 to vector<16x1xf32>
    %130 = arith.addf %126, %129 : vector<16x1xf32>
    %131 = math.rsqrt %130 : vector<16x1xf32>
    %132 = vector.broadcast %131 : vector<16x1xf32> to vector<16x32xf32>
    %133 = arith.mulf %128, %132 : vector<16x32xf32>
    %134 = vector.broadcast %8 : vector<1x32xf32> to vector<16x32xf32>
    %135 = arith.mulf %133, %134 : vector<16x32xf32>
    %136 = vector.broadcast %9 : vector<1x32xf32> to vector<16x32xf32>
    %137 = arith.addf %135, %136 : vector<16x32xf32>
    %c0_48 = arith.constant 0 : index
    %c0_49 = arith.constant 0 : index
    %138 = vector.load %arg7[%c0_48, %c0_49] : memref<32x64xf32, #tpu.memory_space<vmem>>, vector<32x64xf32>
    %cst_50 = arith.constant dense<0.000000e+00> : vector<16x64xf32>
    %139 = tpu.matmul %137, %138, %cst_50 {dimension_numbers = #tpu.dot_dimension_numbers<[1], [0], [0], [1], [0, 0, 1, 1], [], []>} : vector<16x32xf32>, vector<32x64xf32>, vector<16x64xf32> -> vector<16x64xf32>
    %140 = vector.broadcast %4 : vector<1x64xf32> to vector<16x64xf32>
    %141 = arith.addf %139, %140 : vector<16x64xf32>
    %cst_51 = arith.constant 0.000000e+00 : f32
    %142 = vector.broadcast %cst_51 : f32 to vector<16x64xf32>
    %143 = arith.maximumf %141, %142 : vector<16x64xf32>
    %c0_52 = arith.constant 0 : index
    %c0_53 = arith.constant 0 : index
    %144 = vector.load %arg8[%c0_52, %c0_53] : memref<64x32xf32, #tpu.memory_space<vmem>>, vector<64x32xf32>
    %cst_54 = arith.constant dense<0.000000e+00> : vector<16x32xf32>
    %145 = tpu.matmul %143, %144, %cst_54 {dimension_numbers = #tpu.dot_dimension_numbers<[1], [0], [0], [1], [0, 0, 1, 1], [], []>} : vector<16x64xf32>, vector<64x32xf32>, vector<16x32xf32> -> vector<16x32xf32>
    %146 = vector.broadcast %5 : vector<1x32xf32> to vector<16x32xf32>
    %147 = arith.addf %145, %146 : vector<16x32xf32>
    %148 = arith.addf %137, %147 : vector<16x32xf32>
    %cst_55 = arith.constant dense<0.000000e+00> : vector<16xf32>
    %149 = vector.multi_reduction <add>, %148, %cst_55 [1] : vector<16x32xf32> to vector<16xf32>
    %150 = vector.shape_cast %149 : vector<16xf32> to vector<16x1xf32>
    %cst_56 = arith.constant 3.200000e+01 : f32
    %151 = vector.broadcast %cst_56 : f32 to vector<16x1xf32>
    %152 = arith.divf %150, %151 : vector<16x1xf32>
    %153 = vector.broadcast %152 : vector<16x1xf32> to vector<16x32xf32>
    %154 = arith.subf %148, %153 : vector<16x32xf32>
    %155 = arith.mulf %154, %154 : vector<16x32xf32>
    %cst_57 = arith.constant dense<0.000000e+00> : vector<16xf32>
    %156 = vector.multi_reduction <add>, %155, %cst_57 [1] : vector<16x32xf32> to vector<16xf32>
    %157 = vector.shape_cast %156 : vector<16xf32> to vector<16x1xf32>
    %cst_58 = arith.constant 3.200000e+01 : f32
    %158 = vector.broadcast %cst_58 : f32 to vector<16x1xf32>
    %159 = arith.divf %157, %158 : vector<16x1xf32>
    %160 = vector.broadcast %152 : vector<16x1xf32> to vector<16x32xf32>
    %161 = arith.subf %148, %160 : vector<16x32xf32>
    %cst_59 = arith.constant 9.99999974E-6 : f32
    %162 = vector.broadcast %cst_59 : f32 to vector<16x1xf32>
    %163 = arith.addf %159, %162 : vector<16x1xf32>
    %164 = math.rsqrt %163 : vector<16x1xf32>
    %165 = vector.broadcast %164 : vector<16x1xf32> to vector<16x32xf32>
    %166 = arith.mulf %161, %165 : vector<16x32xf32>
    %167 = vector.broadcast %10 : vector<1x32xf32> to vector<16x32xf32>
    %168 = arith.mulf %166, %167 : vector<16x32xf32>
    %169 = vector.broadcast %11 : vector<1x32xf32> to vector<16x32xf32>
    %170 = arith.addf %168, %169 : vector<16x32xf32>
    %171 = vector.shape_cast %170 : vector<16x32xf32> to vector<2x8x32xf32>
    %c0_60 = arith.constant 0 : index
    %c0_61 = arith.constant 0 : index
    %c0_62 = arith.constant 0 : index
    %172 = vector.load %arg10[%c0_60, %c0_61, %c0_62] : memref<2x8x32xf32, #tpu.memory_space<vmem>>, vector<2x8x32xf32>
    tpu.vector_store %arg10[%c0_60, %c0_61, %c0_62], %171 {strides = array<i32>} : memref<2x8x32xf32, #tpu.memory_space<vmem>>, vector<2x8x32xf32>,
    return
  }
  func.func @transform_0(%arg0: i32) -> (i32, i32, i32) {
    %c0_i32 = arith.constant 0 : i32
    %c0_i32_0 = arith.constant 0 : i32
    %c0_i32_1 = arith.constant 0 : i32
    return %arg0, %c0_i32, %c0_i32_0 : i32, i32, i32
  }
  func.func @transform_1(%arg0: i32) -> (i32, i32, i32) {
    %c0_i32 = arith.constant 0 : i32
    %c0_i32_0 = arith.constant 0 : i32
    %c0_i32_1 = arith.constant 0 : i32
    return %arg0, %c0_i32, %c0_i32_0 : i32, i32, i32
  }
  func.func @transform_2(%arg0: i32) -> (i32, i32) {
    %c0_i32 = arith.constant 0 : i32
    %c0_i32_0 = arith.constant 0 : i32
    %c0_i32_1 = arith.constant 0 : i32
    return %c0_i32, %c0_i32_0 : i32, i32
  }
  func.func @transform_3(%arg0: i32) -> (i32, i32) {
    %c0_i32 = arith.constant 0 : i32
    %c0_i32_0 = arith.constant 0 : i32
    %c0_i32_1 = arith.constant 0 : i32
    return %c0_i32, %c0_i32_0 : i32, i32
  }
  func.func @transform_4(%arg0: i32) -> (i32, i32) {
    %c0_i32 = arith.constant 0 : i32
    %c0_i32_0 = arith.constant 0 : i32
    %c0_i32_1 = arith.constant 0 : i32
    return %c0_i32, %c0_i32_0 : i32, i32
  }
  func.func @transform_5(%arg0: i32) -> (i32, i32) {
    %c0_i32 = arith.constant 0 : i32
    %c0_i32_0 = arith.constant 0 : i32
    %c0_i32_1 = arith.constant 0 : i32
    return %c0_i32, %c0_i32_0 : i32, i32
  }
  func.func @transform_6(%arg0: i32) -> (i32, i32) {
    %c0_i32 = arith.constant 0 : i32
    %c0_i32_0 = arith.constant 0 : i32
    %c0_i32_1 = arith.constant 0 : i32
    return %c0_i32, %c0_i32_0 : i32, i32
  }
  func.func @transform_7(%arg0: i32) -> (i32, i32) {
    %c0_i32 = arith.constant 0 : i32
    %c0_i32_0 = arith.constant 0 : i32
    %c0_i32_1 = arith.constant 0 : i32
    return %c0_i32, %c0_i32_0 : i32, i32
  }
  func.func @transform_8(%arg0: i32) -> (i32, i32) {
    %c0_i32 = arith.constant 0 : i32
    %c0_i32_0 = arith.constant 0 : i32
    %c0_i32_1 = arith.constant 0 : i32
    return %c0_i32, %c0_i32_0 : i32, i32
  }
  func.func @transform_9(%arg0: i32) -> (i32, i32, i32) {
    %c0_i32 = arith.constant 0 : i32
    %c0_i32_0 = arith.constant 0 : i32
    %c0_i32_1 = arith.constant 0 : i32
    return %arg0, %c0_i32, %c0_i32_0 : i32, i32, i32
  }
}

</mosaic_0001>

<bundles_post_ra>
// kernel: tpu_custom_call.1
= control target key start
LH: loop header
LB: loop body
LE: loop exit
PB: predicated region body
PF: predicated region fallthrough
CT: control target
= control target key end

     0   :  { %14 = vsyncpa [#allocation3], 0  ;;  %s7589_s0 = inlined_call_operand.hbm [shape: f32[2,8,32], index: 0, kind: input, shape index: {}]   ;;  %s7590_s1 = inlined_call_operand.hbm [shape: f32[2,8,32], index: 1, kind: input, shape index: {}]   ;;  %s7591_s2 = inlined_call_operand.vmem [shape: f32[32,96], index: 2, kind: input, shape index: {}]   ;;  %s7592_s3 = inlined_call_operand.vmem [shape: f32[32,32], index: 3, kind: input, shape index: {}]   ;;  %s7593_s4 = inlined_call_operand.vmem [shape: f32[32,96], index: 4, kind: input, shape index: {}]   ;;  %s7594_s5 = inlined_call_operand.hbm [shape: f32[32,32], index: 5, kind: input, shape index: {}]   ;;  %s7595_s6 = inlined_call_operand.hbm [shape: f32[32,64], index: 6, kind: input, shape index: {}]   ;;  %s7596_s7 = inlined_call_operand.vmem [shape: f32[64,32], index: 7, kind: input, shape index: {}]   ;;  %s7597_s8 = inlined_call_operand.vmem [shape: f32[16,128], index: 8, kind: input, shape index: {}]   ;;  %s7598_s9 = inlined_call_operand.hbm [shape: f32[2,8,32], index: 9, kind: output, shape index: {}]  }
   0x1   :  { %15 = vsyncpa [#allocation6], 0 }
   0x2   :  { %16 = vsyncpa [#allocation9], 0 }
   0x3   :  { %17 = vsyncpa [#allocation4], 0  ;;  %s6569_s30 = smov [#allocation5]   ;;  %s6570_s11 = smov [#allocation2]  }
   0x4   :  { %s35_s10 = sshll.u32 %s6569_s30, 4  ;;  %s23_s12 = sshll.u32 %s6570_s11, 4  ;;  %s36_s10 = int_to_ptr.vmem [resolvable:$true] %s35_s10  ;;  %s6637_s12 = int_to_ptr.vmem [resolvable:$true] %s23_s12 }
   0x5   :  { %s6451_s15 = scalar_lea.hbm %s7590_s1, 256 }
   0x6   :  { %p6452_p0 = scmp.ne.s32.totalorder %s7590_s1, %s6451_s15  ;;  %p6455_p1 = scmp.lt.u32.totalorder %s6451_s15, %s7590_s1 }
   0x8   :  { %p6457_p2 = pnand %p6455_p1, %p6452_p0 }
   0xa   :  { %6460 = shalt.err (!%p6457_p2)
}
   0xb   :  { %s6461_s20 = scalar_lea.vmem %s36_s10, 256  ;;  %p6466_p4 = scmp.lt.s32.totalorder %s36_s10, %s36_s10 }
   0xc   :  { %p6462_p3 = scmp.ne.s32.totalorder %s36_s10, %s6461_s20  ;;  %p6467_p5 = scmp.lt.s32.totalorder %s6461_s20, %s6461_s20 }
   0xe   :  { %p6468_p6 = por %p6467_p5, %p6466_p4 }
  0x10   :  { %p6469_p7 = pnand %p6468_p6, %p6462_p3 }
  0x12   :  { %6472 = shalt.err (!%p6469_p7)
}
  0x13   :  { %s6571_s21 = smov 128   ;;  %s6572_s22 = smov 8  }
  0x14   :  { %41 = dma.hbm_to_vmem [thread:$0]  %s7590_s1, 256, %s36_s10, [#allocation6], %s6571_s21, %s6571_s21, %s6572_s22  }
  0x15   :  { %s6473_s27 = scalar_lea.hbm %s7589_s0, 256 }
  0x16   :  { %p6474_p8 = scmp.ne.s32.totalorder %s7589_s0, %s6473_s27  ;;  %p6477_p9 = scmp.lt.u32.totalorder %s6473_s27, %s7589_s0 }
  0x18   :  { %p6479_p10 = pnand %p6477_p9, %p6474_p8 }
  0x1a   :  { %6482 = shalt.err (!%p6479_p10)
}
  0x1b   :  { %s6483_s13 = scalar_lea.vmem %s6637_s12, 256  ;;  %p6488_p12 = scmp.lt.s32.totalorder %s6637_s12, %s6637_s12 }
  0x1c   :  { %p6484_p11 = scmp.ne.s32.totalorder %s6637_s12, %s6483_s13  ;;  %p6489_p13 = scmp.lt.s32.totalorder %s6483_s13, %s6483_s13 }
  0x1e   :  { %p6490_p0 = por %p6489_p13, %p6488_p12 }
  0x20   :  { %p6491_p1 = pnand %p6490_p0, %p6484_p11 }
  0x22   :  { %6494 = shalt.err (!%p6491_p1)
}
  0x23   :  { %29 = dma.hbm_to_vmem [thread:$0]  %s7589_s0, 256, %s6637_s12, [#allocation3], %s6571_s21, %s6571_s21, %s6572_s22  }
  0x24   :  { %s6573_s14 = smov [#allocation7]   ;;  %s6574_s16 = smov [#allocation8]  }
  0x25   :  { %s53_s15 = sshll.u32 %s6573_s14, 4  ;;  %s65_s17 = sshll.u32 %s6574_s16, 4  ;;  %s54_s15 = int_to_ptr.vmem [resolvable:$true] %s53_s15  ;;  %s6674_s17 = int_to_ptr.vmem [resolvable:$true] %s65_s17 }
  0x26   :  { %s6495_s20 = scalar_lea.hbm %s7594_s5, 512 }
  0x27   :  { %p6496_p2 = scmp.ne.s32.totalorder %s7594_s5, %s6495_s20  ;;  %p6499_p3 = scmp.lt.u32.totalorder %s6495_s20, %s7594_s5 }
  0x29   :  { %p6501_p4 = pnand %p6499_p3, %p6496_p2 }
  0x2b   :  { %6504 = shalt.err (!%p6501_p4)
}
  0x2c   :  { %s6505_s0 = scalar_lea.vmem %s54_s15, 512  ;;  %p6510_p6 = scmp.lt.s32.totalorder %s54_s15, %s54_s15 }
  0x2d   :  { %p6506_p5 = scmp.ne.s32.totalorder %s54_s15, %s6505_s0  ;;  %p6511_p7 = scmp.lt.s32.totalorder %s6505_s0, %s6505_s0 }
  0x2f   :  { %p6512_p8 = por %p6511_p7, %p6510_p6 }
  0x31   :  { %p6513_p9 = pnand %p6512_p8, %p6506_p5 }
  0x33   :  { %6516 = shalt.err (!%p6513_p9)
}
  0x34   :  { %59 = dma.hbm_to_vmem [thread:$0]  %s7594_s5, 512, %s54_s15, [#allocation6], %s6571_s21, %s6571_s21, %s6572_s22  }
  0x35   :  { %s6517_s30 = scalar_lea.hbm %s7595_s6, 512 }
  0x36   :  { %p6518_p10 = scmp.ne.s32.totalorder %s7595_s6, %s6517_s30  ;;  %p6521_p11 = scmp.lt.u32.totalorder %s6517_s30, %s7595_s6 }
  0x38   :  { %p6523_p12 = pnand %p6521_p11, %p6518_p10 }
  0x3a   :  { %6526 = shalt.err (!%p6523_p12)
}
  0x3b   :  { %s6527_s14 = scalar_lea.vmem %s6674_s17, 512  ;;  %p6532_p0 = scmp.lt.s32.totalorder %s6674_s17, %s6674_s17 }
  0x3c   :  { %p6528_p13 = scmp.ne.s32.totalorder %s6674_s17, %s6527_s14  ;;  %p6533_p1 = scmp.lt.s32.totalorder %s6527_s14, %s6527_s14 }
  0x3e   :  { %p6534_p2 = por %p6533_p1, %p6532_p0 }
  0x40   :  { %p6535_p3 = pnand %p6534_p2, %p6528_p13 }
  0x42   :  { %6538 = shalt.err (!%p6535_p3)
}
  0x43   :  { %71 = dma.hbm_to_vmem [thread:$0]  %s7595_s6, 512, %s6674_s17, [#allocation9], %s6571_s21, %s6571_s21, %s6572_s22  }
  0x44   :  { %6561 = dma.done.wait [#allocation3], 256  }
  0x45   :  { %6562 = vsyncadd [#allocation3], 4294967040 }
  0x46   :  { %6563 = dma.done.wait [#allocation6], 768  }
  0x47   :  { %6564 = vsyncadd [#allocation6], 4294966528 }
  0x48   :  { %6565 = dma.done.wait [#allocation9], 512  }
  0x49   :  { %6566 = vsyncadd [#allocation9], 4294966784  ;;  %vm116_vm0 = vcmask 261120   ;;  %v104_v0 = vld [vmem:[%s7591_s2] sm:$0xff]  ;;  %v105_v1 = vld [vmem:[%s7591_s2 + $0x8] sm:$0xff]  ;;  %s6575_s0 = smov 104   ;;  %v223_v22 = vlaneseq }
  0x4a   :  { %v106_v2 = vld [vmem:[%s7591_s2 + $0x10] sm:$0xff]  ;;  %v6281_v3 = vpack.c.bf16 %v105_v1, %v104_v0  ;;  %v107_v4 = vld [vmem:[%s7591_s2 + $0x18] sm:$0xff]  ;;  %v100_v5 = vld [vmem:[#allocation2] sm:$0xff]  ;;  %s6576_s2 = smov 120   ;;  %s6577_s12 = smov 112   ;;  %v6579_v19 = vmov 0.0  }
  0x4b   :  { %v6285_v6 = vpack.c.bf16 %v107_v4, %v106_v2  ;;  %6044 = vmatprep.mubr.msk.f32.mxu1 %vm116_vm0, %v100_v5  ;;  %v101_v7 = vld [vmem:[#allocation2 + $0x8] sm:$0xff]  ;;  %v5820_v8 = vld [vmem:[%s7597_s8] ss:$0 sm:$0xff]  ;;  %s6578_s27 = smov 96   ;;  %s6580_s28 = smov 64   ;;  %6057 = vmatprep.subr.mxu0 %v6579_v19  ;;  %vm6581_vm1 = vmmov 0  }
  0x4c   :  { %6282 = vmatprep.subr.bf16.mxu1 %v6281_v3  ;;  %6059 = vmatprep.mubr.msk.f32.mxu0 %vm6581_vm1, %v6579_v19  ;;  %v6582_v20 = vmov 1983009808   ;;  %v224_v24 = vshrl.u32 %v223_v22, 7  ;;  %v6583_v25 = vmov 1934713408   ;;  %vm1082_vm2 = vcmask 64512  }
  0x4d   :  { %6284 = vmatpush3.bf16.msra.mxu1 %v6281_v3  ;;  %v221_v21 = vunpack.c.l.s4 %v6582_v20  ;;  %v253_v26 = vunpack.c.l.s4 %v6583_v25  ;;  %s6584_s29 = smov 16   ;;  %s6585_s30 = smov 24   ;;  %vm2661_vm3 = vcmask 130048   ;;  %vm2664_vm4 = vcmask 195584  }
  0x4e   :  { %6286 = vmatprep.subr.bf16.mxu1 %v6285_v6  ;;  %vm5677_vm5 = vcmask 523264  }
  0x4f   :  { %v222_v23 = vunpack.c.0.s8 %v221_v21  ;;  %v254_v32 = vunpack.c.0.s8 %v253_v26 }
  0x51   :  { %6288 = vmatpush3.bf16.msra.mxu1 %v6285_v6  ;;  %v6775_v29 = vsub.s32 %v222_v23, %v224_v24  ;;  %v6785_v37 = vsub.s32 %v254_v32, %v224_v24 }
  0x52   :  { %6047 = vmatprep.subr.mxu1 %v6579_v19 }
  0x54   :  { %6045 = vmatmul.mubr.msk.f32.vlgmr.msra.gmra.mrb[0].mxu1 %vm116_vm0, %v101_v7 }
  0x55   :  { %6049 = vmatprep.mubr.msk.f32.mxu1 %vm6581_vm1, %v6579_v19 }
 0x127   :  { %v6046_v9 = vpop.f32.mrb[0].mxu1 }
 0x128   :  { %v189_v10 = vpop.f32.mrb[1].mxu1  ;;  %v6730_v12 = vadd.f32 %v6046_v9, %v5820_v8 }
 0x129   :  { %v190_v11 = vadd.f32 %v5820_v8, %v189_v10 }
 0x12b   :  { %212 = vrot.lane.b32.xlu1 %v190_v11, %s6575_s0  ;;  %200 = vrot.lane.b32.xlu0 %v190_v11, %s6576_s2 }
 0x12f   :  { %202 = vrot.lane.b32.xlu1 %v6730_v12, %s6576_s2  ;;  %206 = vrot.lane.b32.xlu0 %v190_v11, %s6577_s12 }
 0x133   :  { %214 = vrot.lane.b32.xlu1 %v6730_v12, %s6575_s0  ;;  %208 = vrot.lane.b32.xlu0 %v6730_v12, %s6577_s12 }
 0x137   :  { %490 = vrot.lane.b32.xlu0 %v190_v11, %s6578_s27 }
 0x19d   :  { %v6740_v13 = vpop.permute.xlu1 %212  ;;  %v6742_v14 = vpop.permute.xlu0 %200 }
 0x19e   :  { %494 = vrot.lane.b32.xlu1 %v6742_v14, %s6578_s27  ;;  %v234_v30 = vcombine.low %v6742_v14, %v6740_v13  ;;  %v235_v31 = vcombine.high %v6742_v14, %v6740_v13 }
 0x1a0   :  { %v242_v35 = vrot.slane %v234_v30, %v6775_v29  ;;  %v249_v36 = vrot.slane %v235_v31, %v6775_v29 }
 0x1a1   :  { %v6746_v15 = vpop.permute.xlu0 %206  ;;  %v6752_v16 = vpop.permute.xlu1 %202 }
 0x1a2   :  { %502 = vrot.lane.b32.xlu1 %v6740_v13, %s6578_s27  ;;  %498 = vrot.lane.b32.xlu0 %v6746_v15, %s6578_s27  ;;  %v218_v27 = vcombine.low %v190_v11, %v6746_v15  ;;  %v219_v28 = vcombine.high %v190_v11, %v6746_v15 }
 0x1a4   :  { %v226_v33 = vrot.slane %v218_v27, %v6775_v29  ;;  %v233_v34 = vrot.slane %v219_v28, %v6775_v29 }
 0x1a5   :  { %v6758_v17 = vpop.permute.xlu1 %214  ;;  %v6760_v18 = vpop.permute.xlu0 %208 }
 0x1a6   :  { %496 = vrot.lane.b32.xlu1 %v6752_v16, %s6578_s27  ;;  %492 = vrot.lane.b32.xlu0 %v6730_v12, %s6578_s27  ;;  %v302_v38 = vcombine.low %v6752_v16, %v6758_v17  ;;  %v286_v39 = vcombine.low %v6730_v12, %v6760_v18  ;;  %v250_v40 = vcombine.low %v226_v33, %v242_v35 }
 0x1a7   :  { %v251_v41 = vcombine.high %v226_v33, %v242_v35  ;;  %v303_v42 = vcombine.high %v6752_v16, %v6758_v17  ;;  %v287_v43 = vcombine.high %v6730_v12, %v6760_v18  ;;  %v266_v44 = vcombine.low %v233_v34, %v249_v36 }
 0x1a8   :  { %v267_v45 = vcombine.high %v233_v34, %v249_v36  ;;  %v310_v46 = vrot.slane %v302_v38, %v6775_v29  ;;  %v294_v47 = vrot.slane %v286_v39, %v6775_v29  ;;  %v258_v48 = vrot.slane %v250_v40, %v6785_v37 }
 0x1a9   :  { %v265_v49 = vrot.slane %v251_v41, %v6785_v37  ;;  %v317_v50 = vrot.slane %v303_v42, %v6775_v29  ;;  %v301_v51 = vrot.slane %v287_v43, %v6775_v29  ;;  %v274_v52 = vrot.slane %v266_v44, %v6785_v37  ;;  %v491_v62 = vpop.permute.xlu0 %490 }
 0x1aa   :  { %504 = vrot.lane.b32.xlu1 %v6758_v17, %s6578_s27  ;;  %500 = vrot.lane.b32.xlu0 %v6760_v18, %s6578_s27  ;;  %v281_v53 = vrot.slane %v267_v45, %v6785_v37  ;;  %v318_v54 = vcombine.low %v294_v47, %v310_v46  ;;  %v319_v55 = vcombine.high %v294_v47, %v310_v46 }
 0x1ab   :  { %v354_v56 = vcombine.low %v258_v48, %v265_v49  ;;  %v334_v57 = vcombine.low %v301_v51, %v317_v50  ;;  %v5823_v58 = vcombine.high %v258_v48, %v265_v49  ;;  %v335_v61 = vcombine.high %v301_v51, %v317_v50 }
 0x1ac   :  { %v370_v59 = vcombine.low %v274_v52, %v281_v53  ;;  %v5824_v60 = vcombine.high %v274_v52, %v281_v53  ;;  %v326_v0 = vrot.slane %v318_v54, %v6785_v37  ;;  %v333_v1 = vrot.slane %v319_v55, %v6785_v37 }
 0x1ad   :  { %v342_v2 = vrot.slane %v334_v57, %v6785_v37  ;;  %v6807_v3 = vrot.slane %v354_v56, %v6775_v29  ;;  %v349_v4 = vrot.slane %v335_v61, %v6785_v37  ;;  %v6811_v7 = vrot.slane %v5823_v58, %v6775_v29 }
 0x1ae   :  { %786 = vrot.lane.b32.xlu1 %v190_v11, %s6580_s28  ;;  %v6814_v8 = vrot.slane %v370_v59, %v6775_v29  ;;  %v6817_v9 = vrot.slane %v5824_v60, %v6775_v29  ;;  %v422_v22 = vcombine.low %v326_v0, %v333_v1  ;;  %v5825_v23 = vcombine.high %v326_v0, %v333_v1 }
 0x1af   :  { %v438_v28 = vcombine.low %v342_v2, %v349_v4  ;;  %v5826_v30 = vcombine.high %v342_v2, %v349_v4  ;;  %v386_v32 = vcombine.low %v6807_v3, %v6811_v7  ;;  %v387_v42 = vcombine.high %v6807_v3, %v6811_v7 }
 0x1b0   :  { %v402_v33 = vcombine.low %v6814_v8, %v6817_v9  ;;  %v6828_v40 = vrot.slane %v422_v22, %v6775_v29  ;;  %v6831_v41 = vrot.slane %v5825_v23, %v6775_v29  ;;  %v403_v43 = vcombine.high %v6814_v8, %v6817_v9 }
 0x1b1   :  { %v6842_v48 = vrot.slane %v438_v28, %v6775_v29  ;;  %v6845_v49 = vrot.slane %v5826_v30, %v6775_v29  ;;  %v6848_v51 = vrot.slane %v386_v32, %v6785_v37 }
 0x1b2   :  { %v6851_v52 = vrot.slane %v402_v33, %v6785_v37  ;;  %v401_v33 = vrot.slane %v387_v42, %v6785_v37 }
 0x210   :  { %v495_v63 = vpop.permute.xlu1 %494 }
 0x214   :  { %v503_v5 = vpop.permute.xlu1 %502  ;;  %v499_v6 = vpop.permute.xlu0 %498 }
 0x215   :  { %v530_v10 = vcombine.low %v495_v63, %v503_v5  ;;  %v531_v11 = vcombine.high %v495_v63, %v503_v5  ;;  %v514_v20 = vcombine.low %v491_v62, %v499_v6  ;;  %v515_v21 = vcombine.high %v491_v62, %v499_v6 }
 0x217   :  { %v538_v24 = vrot.slane %v530_v10, %v6775_v29  ;;  %v545_v25 = vrot.slane %v531_v11, %v6775_v29  ;;  %v522_v26 = vrot.slane %v514_v20, %v6775_v29  ;;  %v529_v27 = vrot.slane %v515_v21, %v6775_v29 }
 0x218   :  { %v497_v31 = vpop.permute.xlu1 %496  ;;  %v493_v39 = vpop.permute.xlu0 %492 }
 0x219   :  { %v546_v34 = vcombine.low %v522_v26, %v538_v24  ;;  %v547_v35 = vcombine.high %v522_v26, %v538_v24  ;;  %v562_v36 = vcombine.low %v529_v27, %v545_v25  ;;  %v563_v38 = vcombine.high %v529_v27, %v545_v25 }
 0x21b   :  { %v554_v44 = vrot.slane %v546_v34, %v6785_v37  ;;  %v561_v45 = vrot.slane %v547_v35, %v6785_v37  ;;  %v570_v46 = vrot.slane %v562_v36, %v6785_v37  ;;  %v577_v47 = vrot.slane %v563_v38, %v6785_v37 }
 0x21c   :  { %v505_v50 = vpop.permute.xlu1 %504  ;;  %v501_v57 = vpop.permute.xlu0 %500  ;;  %v417_v34 = vrot.slane %v403_v43, %v6785_v37 }
 0x21d   :  { %v650_v53 = vcombine.low %v554_v44, %v561_v45  ;;  %v5827_v54 = vcombine.high %v554_v44, %v561_v45  ;;  %v666_v55 = vcombine.low %v570_v46, %v577_v47  ;;  %v5828_v56 = vcombine.high %v570_v46, %v577_v47 }
 0x21e   :  { %v598_v58 = vcombine.low %v497_v31, %v505_v50  ;;  %v599_v59 = vcombine.high %v497_v31, %v505_v50  ;;  %v582_v60 = vcombine.low %v493_v39, %v501_v57  ;;  %v583_v61 = vcombine.high %v493_v39, %v501_v57 }
 0x21f   :  { %v657_v62 = vrot.slane %v650_v53, %v6775_v29  ;;  %v665_v63 = vrot.slane %v5827_v54, %v6775_v29  ;;  %v673_v0 = vrot.slane %v666_v55, %v6775_v29  ;;  %v681_v1 = vrot.slane %v5828_v56, %v6775_v29 }
 0x220   :  { %v606_v2 = vrot.slane %v598_v58, %v6775_v29  ;;  %v613_v3 = vrot.slane %v599_v59, %v6775_v29  ;;  %v590_v4 = vrot.slane %v582_v60, %v6775_v29  ;;  %v597_v5 = vrot.slane %v583_v61, %v6775_v29 }
 0x221   :  { %v682_v6 = vcombine.low %v657_v62, %v665_v63  ;;  %v698_v7 = vcombine.low %v673_v0, %v681_v1  ;;  %v683_v8 = vcombine.high %v657_v62, %v665_v63  ;;  %v699_v9 = vcombine.high %v673_v0, %v681_v1 }
 0x222   :  { %v614_v10 = vcombine.low %v590_v4, %v606_v2  ;;  %v615_v11 = vcombine.high %v590_v4, %v606_v2  ;;  %v630_v20 = vcombine.low %v597_v5, %v613_v3  ;;  %v631_v21 = vcombine.high %v597_v5, %v613_v3 }
 0x223   :  { %v690_v22 = vrot.slane %v682_v6, %v6785_v37  ;;  %v706_v23 = vrot.slane %v698_v7, %v6785_v37  ;;  %v697_v24 = vrot.slane %v683_v8, %v6785_v37  ;;  %v713_v25 = vrot.slane %v699_v9, %v6785_v37 }
 0x224   :  { %v622_v26 = vrot.slane %v614_v10, %v6785_v37  ;;  %v629_v27 = vrot.slane %v615_v11, %v6785_v37  ;;  %v638_v28 = vrot.slane %v630_v20, %v6785_v37  ;;  %v645_v30 = vrot.slane %v631_v21, %v6785_v37 }
 0x225   :  { %v714_v31 = vcombine.low %v690_v22, %v706_v23  ;;  %v716_v32 = vcombine.low %v697_v24, %v713_v25  ;;  %v418_v44 = vcombine.low %v6848_v51, %v6851_v52  ;;  %v420_v43 = vcombine.low %v401_v33, %v417_v34 }
 0x226   :  { %v718_v35 = vcombine.low %v622_v26, %v629_v27  ;;  %v5829_v36 = vcombine.high %v622_v26, %v629_v27  ;;  %v734_v38 = vcombine.low %v638_v28, %v645_v30  ;;  %v5830_v39 = vcombine.high %v638_v28, %v645_v30 }
 0x227   :  { %6048 = vmatpush3.xpose.msk.msra.mxu1 %vm1082_vm2, %v714_v31  ;;  %6058 = vmatpush3.xpose.msk.msra.mxu0 %vm1082_vm2, %v716_v32  ;;  %v715_v50 = vcombine.high %v690_v22, %v706_v23  ;;  %v454_v53 = vcombine.low %v6828_v40, %v6831_v41  ;;  %v470_v54 = vcombine.low %v6842_v48, %v6845_v49 }
 0x228   :  { %v725_v45 = vrot.slane %v718_v35, %v6775_v29  ;;  %v733_v46 = vrot.slane %v5829_v36, %v6775_v29  ;;  %v741_v47 = vrot.slane %v734_v38, %v6775_v29  ;;  %v749_v42 = vrot.slane %v5830_v39, %v6775_v29  ;;  %6052 = vmatprep.subr.mxu1 %v6579_v19 }
 0x229   :  { %6067 = vmatprep.subr.mxu0 %v6579_v19  ;;  %v455_v59 = vcombine.high %v6828_v40, %v6831_v41  ;;  %v419_v60 = vcombine.high %v6848_v51, %v6851_v52  ;;  %v717_v63 = vcombine.high %v697_v24, %v713_v25  ;;  %v462_v0 = vrot.slane %v454_v53, %v6785_v37 }
 0x22a   :  { %v750_v55 = vcombine.low %v725_v45, %v733_v46  ;;  %v751_v56 = vcombine.high %v725_v45, %v733_v46  ;;  %v766_v57 = vcombine.low %v741_v47, %v749_v42  ;;  %v767_v58 = vcombine.high %v741_v47, %v749_v42  ;;  %6050 = vmatmul.mubr.msk.f32.vlgmr.msra.gmra.mrb[2].mxu1 %vm1082_vm2, %v418_v44  ;;  %v787_v42 = vpop.permute.xlu1 %786 }
 0x22b   :  { %6060 = vmatmul.mubr.msk.f32.vlgmr.msra.gmra.mrb[0].mxu0 %vm1082_vm2, %v420_v43  ;;  %6053 = vmatpush3.xpose.msk.msra.mxu1 %vm1082_vm2, %v715_v50  ;;  %v478_v40 = vrot.slane %v470_v54, %v6785_v37  ;;  %v471_v41 = vcombine.high %v6842_v48, %v6845_v49  ;;  %v421_v2 = vcombine.high %v401_v33, %v417_v34 }
 0x22c   :  { %6054 = vmatprep.mubr.msk.f32.mxu1 %vm6581_vm1, %v6579_v19  ;;  %6062 = vmatprep.subr.mxu1 %v6579_v19  ;;  %v758_v61 = vrot.slane %v750_v55, %v6785_v37  ;;  %v774_v62 = vrot.slane %v766_v57, %v6785_v37  ;;  %v765_v52 = vrot.slane %v751_v56, %v6785_v37 }
 0x22d   :  { %6069 = vmatprep.mubr.msk.f32.mxu0 %vm6581_vm1, %v6579_v19  ;;  %v781_v1 = vrot.slane %v767_v58, %v6785_v37  ;;  %v486_v3 = vcombine.low %v462_v0, %v478_v40  ;;  %v469_v49 = vrot.slane %v455_v59, %v6785_v37  ;;  %v485_v4 = vrot.slane %v471_v41, %v6785_v37 }
 0x22e   :  { %6055 = vmatmul.mubr.msk.f32.vlgmr.msra.gmra.mrb[4].mxu1 %vm1082_vm2, %v419_v60  ;;  %v782_v51 = vcombine.low %v758_v61, %v774_v62  ;;  %v783_v48 = vcombine.high %v758_v61, %v774_v62  ;;  %v487_v6 = vcombine.high %v462_v0, %v478_v40 }
 0x22f   :  { %6063 = vmatpush3.xpose.msk.msra.mxu1 %vm1082_vm2, %v717_v63  ;;  %6064 = vmatprep.mubr.msk.f32.mxu1 %vm6581_vm1, %v6579_v19  ;;  %v784_v5 = vcombine.low %v765_v52, %v781_v1  ;;  %v488_v7 = vcombine.low %v469_v49, %v485_v4  ;;  %v785_v8 = vcombine.high %v765_v52, %v781_v1 }
 0x230   :  { %6068 = vmatpush3.xpose.msk.msra.mxu0 %vm1082_vm2, %v782_v51  ;;  %6072 = vmatprep.subr.mxu1 %v6579_v19  ;;  %v489_v9 = vcombine.high %v469_v49, %v485_v4 }
 0x231   :  { %6077 = vmatprep.subr.mxu0 %v6579_v19 }
 0x232   :  { %6065 = vmatmul.mubr.msk.f32.vlgmr.msra.gmra.mrb[6].mxu1 %vm1082_vm2, %v421_v2 }
 0x233   :  { %6070 = vmatmul.mubr.msk.f32.vlgmr.msra.gmra.mrb[2].mxu0 %vm1082_vm2, %v486_v3  ;;  %6073 = vmatpush3.xpose.msk.msra.mxu1 %vm1082_vm2, %v783_v48 }
 0x234   :  { %6078 = vmatpush3.xpose.msk.msra.mxu0 %vm1082_vm2, %v784_v5  ;;  %6074 = vmatprep.mubr.msk.f32.mxu1 %vm6581_vm1, %v6579_v19 }
 0x235   :  { %6079 = vmatprep.mubr.msk.f32.mxu0 %vm6581_vm1, %v6579_v19  ;;  %6082 = vmatprep.subr.mxu1 %v6579_v19 }
 0x236   :  { %6075 = vmatmul.mubr.msk.f32.vlgmr.msra.gmra.mrb[8].mxu1 %vm1082_vm2, %v487_v6  ;;  %6087 = vmatprep.subr.mxu0 %v6579_v19 }
 0x237   :  { %6080 = vmatmul.mubr.msk.f32.vlgmr.msra.gmra.mrb[4].mxu0 %vm1082_vm2, %v488_v7  ;;  %6083 = vmatpush3.xpose.msk.msra.mxu1 %vm1082_vm2, %v785_v8 }
 0x238   :  { %6084 = vmatprep.mubr.msk.f32.mxu1 %vm6581_vm1, %v6579_v19  ;;  %6092 = vmatprep.subr.mxu1 %v6579_v19 }
 0x239   :  { %6089 = vmatprep.mubr.msk.f32.mxu0 %vm6581_vm1, %v6579_v19 }
 0x23a   :  { %6085 = vmatmul.mubr.msk.f32.vlgmr.msra.gmra.mrb[10].mxu1 %vm1082_vm2, %v489_v9 }
 0x23b   :  { %6094 = vmatprep.mubr.msk.f32.mxu1 %vm6581_vm1, %v6579_v19 }
 0x2fd   :  { %v1155_v10 = vpop.f32.mrb[2].mxu1 }
 0x2fe   :  { %v1307_v11 = vpop.f32.mrb[0].mxu0  ;;  %v6051_v20 = vpop.f32.mrb[3].mxu1  ;;  %v1691_v21 = vsel %vm1082_vm2, %v1155_v10, -inf }
 0x2ff   :  { %v6061_v22 = vpop.f32.mrb[1].mxu0  ;;  %1692 = vmax.xlane.f32.xlu0 %v1691_v21  ;;  %v1697_v25 = vsel %vm1082_vm2, %v1307_v11, -inf }
 0x301   :  { %v1231_v23 = vpop.f32.mrb[4].mxu1 }
 0x302   :  { %v6056_v24 = vpop.f32.mrb[5].mxu1  ;;  %v1694_v26 = vsel %vm1082_vm2, %v1231_v23, -inf }
 0x303   :  { %1698 = vmax.xlane.f32.xlu0 %v1697_v25  ;;  %1695 = vmax.xlane.f32.xlu1 %v1694_v26 }
 0x305   :  { %v1383_v27 = vpop.f32.mrb[6].mxu1 }
 0x306   :  { %v1459_v28 = vpop.f32.mrb[2].mxu0  ;;  %v6066_v30 = vpop.f32.mrb[7].mxu1  ;;  %v1700_v31 = vsel %vm1082_vm2, %v1383_v27, -inf }
 0x307   :  { %v6071_v32 = vpop.f32.mrb[3].mxu0  ;;  %1701 = vmax.xlane.f32.xlu0 %v1700_v31  ;;  %v1703_v33 = vsel %vm1082_vm2, %v1459_v28, -inf }
 0x308   :  { %1704 = vmax.xlane.f32.xlu1 %v1703_v33 }
 0x309   :  { %v1535_v34 = vpop.f32.mrb[8].mxu1 }
 0x30a   :  { %v1611_v35 = vpop.f32.mrb[4].mxu0  ;;  %v6076_v36 = vpop.f32.mrb[9].mxu1  ;;  %v1706_v38 = vsel %vm1082_vm2, %v1535_v34, -inf }
 0x30b   :  { %v6081_v39 = vpop.f32.mrb[5].mxu0  ;;  %1707 = vmax.xlane.f32.xlu0 %v1706_v38  ;;  %v1709_v44 = vsel %vm1082_vm2, %v1611_v35, -inf }
 0x30c   :  { %1710 = vmax.xlane.f32.xlu1 %v1709_v44 }
 0x30d   :  { %v1687_v45 = vpop.f32.mrb[10].mxu1 }
 0x30e   :  { %v6086_v46 = vpop.f32.mrb[11].mxu1  ;;  %v1712_v47 = vsel %vm1082_vm2, %v1687_v45, -inf }
 0x30f   :  { %1713 = vmax.xlane.f32.xlu0 %v1712_v47 }
 0x31d   :  { %794 = vrot.lane.b32.xlu1 %v6746_v15, %s6580_s28 }
 0x321   :  { %798 = vrot.lane.b32.xlu1 %v6740_v13, %s6580_s28 }
 0x325   :  { %788 = vrot.lane.b32.xlu1 %v6730_v12, %s6580_s28  ;;  %790 = vrot.lane.b32.xlu0 %v6742_v14, %s6580_s28 }
 0x38c   :  { %v1693_v43 = vpop.xlane.xlu0 %1692 }
 0x38d   :  { %v1715_v50 = vsub.f32 %v1155_v10, %v1693_v43 }
 0x38f   :  { %v1723_v53 = vmul.f32 1.442695, %v1715_v50 }
 0x390   :  { %v1696_v54 = vpop.xlane.xlu1 %1695  ;;  %v1699_v55 = vpop.xlane.xlu0 %1698 }
 0x391   :  { %6373 = vpow2.f32 %v1723_v53  ;;  %v1716_v56 = vsub.f32 %v1231_v23, %v1696_v54  ;;  %v1717_v57 = vsub.f32 %v1307_v11, %v1699_v55 }
 0x393   :  { %v1725_v58 = vmul.f32 1.442695, %v1716_v56  ;;  %v1727_v15 = vmul.f32 1.442695, %v1717_v57 }
 0x394   :  { %v1702_v59 = vpop.xlane.xlu0 %1701 }
 0x395   :  { %6375 = vpow2.f32 %v1725_v58  ;;  %v1705_v13 = vpop.xlane.xlu1 %1704  ;;  %v1718_v60 = vsub.f32 %v1383_v27, %v1702_v59 }
 0x396   :  { %6377 = vpow2.f32 %v1727_v15  ;;  %v1719_v12 = vsub.f32 %v1459_v28, %v1705_v13 }
 0x397   :  { %v1729_v62 = vmul.f32 1.442695, %v1718_v60 }
 0x398   :  { %v1731_v61 = vmul.f32 1.442695, %v1719_v12  ;;  %v1708_v14 = vpop.xlane.xlu0 %1707 }
 0x399   :  { %v1711_v63 = vpop.xlane.xlu1 %1710  ;;  %v1720_v0 = vsub.f32 %v1535_v34, %v1708_v14 }
 0x39a   :  { %6379 = vpow2.f32 %v1731_v61  ;;  %v1721_v40 = vsub.f32 %v1611_v35, %v1711_v63 }
 0x39b   :  { %v6951_v41 = vpop.eup %6373  ;;  %v1733_v51 = vmul.f32 1.442695, %v1720_v0  ;;  %6381 = vpow2.f32 %v1729_v62 }
 0x39c   :  { %v1735_v52 = vmul.f32 1.442695, %v1721_v40  ;;  %v1714_v1 = vpop.xlane.xlu0 %1713  ;;  %v1739_v2 = vsel %vm1082_vm2, %v6951_v41, 0.0 }
 0x39d   :  { %6383 = vpow2.f32 %v1733_v51  ;;  %v795_v3 = vpop.permute.xlu1 %794  ;;  %v1722_v48 = vsub.f32 %v1687_v45, %v1714_v1  ;;  %1740 = vadd.xlane.f32.xlu1 %v1739_v2 }
 0x39e   :  { %v810_v4 = vcombine.low %v787_v42, %v795_v3  ;;  %6385 = vpow2.f32 %v1735_v52  ;;  %v811_v6 = vcombine.high %v787_v42, %v795_v3 }
 0x39f   :  { %v6955_v49 = vpop.eup %6375  ;;  %v1737_v7 = vmul.f32 1.442695, %v1722_v48 }
 0x3a0   :  { %v6957_v5 = vpop.eup %6377  ;;  %v791_v8 = vpop.permute.xlu0 %790  ;;  %v1742_v9 = vsel %vm1082_vm2, %v6955_v49, 0.0  ;;  %v818_v22 = vrot.slane %v810_v4, %v6775_v29  ;;  %v825_v24 = vrot.slane %v811_v6, %v6775_v29 }
 0x3a1   :  { %v799_v10 = vpop.permute.xlu1 %798  ;;  %1743 = vadd.xlane.f32.xlu0 %v1742_v9  ;;  %v1745_v11 = vsel %vm1082_vm2, %v6957_v5, 0.0  ;;  %6387 = vpow2.f32 %v1737_v7 }
 0x3a2   :  { %v826_v20 = vcombine.low %v791_v8, %v799_v10  ;;  %v827_v21 = vcombine.high %v791_v8, %v799_v10  ;;  %1746 = vadd.xlane.f32.xlu1 %v1745_v11 }
 0x3a4   :  { %v6964_v23 = vpop.eup %6379  ;;  %v834_v25 = vrot.slane %v826_v20, %v6775_v29  ;;  %v841_v26 = vrot.slane %v827_v21, %v6775_v29 }
 0x3a5   :  { %v1751_v27 = vsel %vm1082_vm2, %v6964_v23, 0.0  ;;  %v6971_v28 = vpop.eup %6381  ;;  %v789_v1 = vpop.permute.xlu1 %788 }
 0x3a6   :  { %v842_v30 = vcombine.low %v818_v22, %v834_v25  ;;  %v843_v31 = vcombine.high %v818_v22, %v834_v25  ;;  %v858_v32 = vcombine.low %v825_v24, %v841_v26  ;;  %v859_v33 = vcombine.high %v825_v24, %v841_v26  ;;  %1752 = vadd.xlane.f32.xlu0 %v1751_v27 }
 0x3a7   :  { %v6973_v34 = vpop.eup %6383  ;;  %v1748_v44 = vsel %vm1082_vm2, %v6971_v28, 0.0 }
 0x3a8   :  { %v850_v35 = vrot.slane %v842_v30, %v6785_v37  ;;  %v857_v36 = vrot.slane %v843_v31, %v6785_v37  ;;  %v866_v38 = vrot.slane %v858_v32, %v6785_v37  ;;  %v873_v39 = vrot.slane %v859_v33, %v6785_v37  ;;  %v6983_v46 = vpop.eup %6385 }
 0x3a9   :  { %v1754_v45 = vsel %vm1082_vm2, %v6973_v34, 0.0  ;;  %v1757_v57 = vsel %vm1082_vm2, %v6983_v46, 0.0 }
 0x3aa   :  { %v946_v47 = vcombine.low %v850_v35, %v857_v36  ;;  %v5831_v42 = vcombine.high %v850_v35, %v857_v36  ;;  %v962_v43 = vcombine.low %v866_v38, %v873_v39  ;;  %v5832_v50 = vcombine.high %v866_v38, %v873_v39  ;;  %1749 = vadd.xlane.f32.xlu0 %v1748_v44 }
 0x3ab   :  { %1755 = vadd.xlane.f32.xlu1 %v1754_v45  ;;  %v6991_v58 = vpop.eup %6387 }
 0x3ac   :  { %v953_v53 = vrot.slane %v946_v47, %v6775_v29  ;;  %v961_v54 = vrot.slane %v5831_v42, %v6775_v29  ;;  %v969_v55 = vrot.slane %v962_v43, %v6775_v29  ;;  %v977_v56 = vrot.slane %v5832_v50, %v6775_v29 }
 0x3ad   :  { %v1760_v63 = vsel %vm1082_vm2, %v6991_v58, 0.0 }
 0x3ae   :  { %1758 = vadd.xlane.f32.xlu0 %v1757_v57  ;;  %v978_v15 = vcombine.low %v953_v53, %v961_v54  ;;  %v994_v59 = vcombine.low %v969_v55, %v977_v56  ;;  %v979_v13 = vcombine.high %v953_v53, %v961_v54  ;;  %v995_v60 = vcombine.high %v969_v55, %v977_v56 }
 0x3b0   :  { %v986_v12 = vrot.slane %v978_v15, %v6785_v37  ;;  %v1002_v61 = vrot.slane %v994_v59, %v6785_v37  ;;  %v993_v62 = vrot.slane %v979_v13, %v6785_v37  ;;  %v1009_v14 = vrot.slane %v995_v60, %v6785_v37 }
 0x3b2   :  { %1761 = vadd.xlane.f32.xlu0 %v1760_v63  ;;  %v1010_v0 = vcombine.low %v986_v12, %v1002_v61  ;;  %v1011_v40 = vcombine.high %v986_v12, %v1002_v61  ;;  %v1012_v51 = vcombine.low %v993_v62, %v1009_v14  ;;  %v1013_v52 = vcombine.high %v993_v62, %v1009_v14 }
 0x3b4   :  { %6088 = vmatpush3.msra.mxu0 %v1010_v0  ;;  %6093 = vmatpush3.msra.mxu1 %v1011_v40 }
 0x3b5   :  { %6097 = vmatprep.subr.mxu0 %v6579_v19  ;;  %6102 = vmatprep.subr.mxu1 %v6579_v19 }
 0x3bc   :  { %796 = vrot.lane.b32.xlu1 %v6760_v18, %s6580_s28 }
 0x3c0   :  { %800 = vrot.lane.b32.xlu1 %v6758_v17, %s6580_s28 }
 0x3c8   :  { %792 = vrot.lane.b32.xlu0 %v6752_v16, %s6580_s28 }
 0x42a   :  { %v1741_v2 = vpop.xlane.xlu1 %1740 }
 0x42b   :  { %6389 = vrcp.f32 %v1741_v2 }
 0x42e   :  { %v1744_v3 = vpop.xlane.xlu0 %1743 }
 0x42f   :  { %v1747_v48 = vpop.xlane.xlu1 %1746  ;;  %6391 = vrcp.f32 %v1744_v3 }
 0x430   :  { %6393 = vrcp.f32 %v1747_v48 }
 0x433   :  { %v1753_v4 = vpop.xlane.xlu0 %1752 }
 0x435   :  { %v6390_v6 = vpop.eup %6389 }
 0x436   :  { %v1771_v7 = vmul.f32 %v6390_v6, %v6951_v41 }
 0x437   :  { %v1750_v8 = vpop.xlane.xlu0 %1749 }
 0x438   :  { %v1756_v9 = vpop.xlane.xlu1 %1755  ;;  %6395 = vrcp.f32 %v1750_v8  ;;  %6090 = vmatmul.mubr.msk.f32.vlgmr.msra.gmra.mrb[6].mxu0 %vm1082_vm2, %v1771_v7 }
 0x439   :  { %v6392_v17 = vpop.eup %6391  ;;  %6098 = vmatpush3.msra.mxu0 %v1012_v51  ;;  %6099 = vmatprep.mubr.msk.f32.mxu0 %vm6581_vm1, %v6579_v19  ;;  %6397 = vrcp.f32 %v1753_v4 }
 0x43a   :  { %v6394_v16 = vpop.eup %6393  ;;  %v1772_v18 = vmul.f32 %v6392_v17, %v6955_v49  ;;  %6107 = vmatprep.subr.mxu0 %v6579_v19  ;;  %6399 = vrcp.f32 %v1756_v9 }
 0x43b   :  { %v1773_v10 = vmul.f32 %v6394_v16, %v6957_v5  ;;  %v1759_v11 = vpop.xlane.xlu0 %1758 }
 0x43c   :  { %6095 = vmatmul.mubr.msk.f32.vlgmr.msra.gmra.mrb[12].mxu1 %vm1082_vm2, %v1772_v18  ;;  %v797_v41 = vpop.permute.xlu1 %796  ;;  %6401 = vrcp.f32 %v1759_v11 }
 0x43d   :  { %6100 = vmatmul.mubr.msk.f32.vlgmr.msra.gmra.mrb[8].mxu0 %vm1082_vm2, %v1773_v10  ;;  %6103 = vmatpush3.msra.mxu1 %v1013_v52  ;;  %v878_v21 = vcombine.low %v789_v1, %v797_v41  ;;  %v879_v22 = vcombine.high %v789_v1, %v797_v41 }
 0x43e   :  { %6104 = vmatprep.mubr.msk.f32.mxu1 %vm6581_vm1, %v6579_v19  ;;  %6112 = vmatprep.subr.mxu1 %v6579_v19 }
 0x43f   :  { %v1762_v20 = vpop.xlane.xlu0 %1761  ;;  %6109 = vmatprep.mubr.msk.f32.mxu0 %vm6581_vm1, %v6579_v19  ;;  %v886_v30 = vrot.slane %v878_v21, %v6775_v29  ;;  %v893_v31 = vrot.slane %v879_v22, %v6775_v29 }
 0x440   :  { %v801_v24 = vpop.permute.xlu1 %800  ;;  %6403 = vrcp.f32 %v1762_v20 }
 0x442   :  { %v6396_v49 = vpop.eup %6395 }
 0x443   :  { %v1774_v5 = vmul.f32 %v6396_v49, %v6971_v28  ;;  %v793_v25 = vpop.permute.xlu0 %792  ;;  %v6398_v15 = vpop.eup %6397 }
 0x444   :  { %v894_v26 = vcombine.low %v793_v25, %v801_v24  ;;  %v895_v27 = vcombine.high %v793_v25, %v801_v24  ;;  %v6400_v61 = vpop.eup %6399  ;;  %v1775_v2 = vmul.f32 %v6398_v15, %v6964_v23 }
 0x445   :  { %6105 = vmatmul.mubr.msk.f32.vlgmr.msra.gmra.mrb[14].mxu1 %vm1082_vm2, %v1774_v5  ;;  %v1776_v3 = vmul.f32 %v6400_v61, %v6973_v34 }
 0x446   :  { %v902_v32 = vrot.slane %v894_v26, %v6775_v29  ;;  %v909_v33 = vrot.slane %v895_v27, %v6775_v29  ;;  %6114 = vmatprep.mubr.msk.f32.mxu1 %vm6581_vm1, %v6579_v19  ;;  %v6402_v63 = vpop.eup %6401 }
 0x447   :  { %v1777_v6 = vmul.f32 %v6402_v63, %v6983_v46 }
 0x448   :  { %v910_v28 = vcombine.low %v886_v30, %v902_v32  ;;  %v911_v35 = vcombine.high %v886_v30, %v902_v32  ;;  %v926_v36 = vcombine.low %v893_v31, %v909_v33  ;;  %v927_v38 = vcombine.high %v893_v31, %v909_v33 }
 0x44a   :  { %v918_v39 = vrot.slane %v910_v28, %v6785_v37  ;;  %v925_v44 = vrot.slane %v911_v35, %v6785_v37  ;;  %v934_v45 = vrot.slane %v926_v36, %v6785_v37  ;;  %v941_v47 = vrot.slane %v927_v38, %v6785_v37  ;;  %v6404_v1 = vpop.eup %6403 }
 0x44b   :  { %v1778_v7 = vmul.f32 %v6404_v1, %v6991_v58 }
 0x44c   :  { %v1014_v42 = vcombine.low %v918_v39, %v925_v44  ;;  %v5833_v43 = vcombine.high %v918_v39, %v925_v44  ;;  %v1030_v50 = vcombine.low %v934_v45, %v941_v47  ;;  %v5834_v53 = vcombine.high %v934_v45, %v941_v47 }
 0x44e   :  { %v1021_v54 = vrot.slane %v1014_v42, %v6775_v29  ;;  %v1029_v55 = vrot.slane %v5833_v43, %v6775_v29  ;;  %v1037_v56 = vrot.slane %v1030_v50, %v6775_v29  ;;  %v1045_v57 = vrot.slane %v5834_v53, %v6775_v29 }
 0x450   :  { %v1046_v59 = vcombine.low %v1021_v54, %v1029_v55  ;;  %v1062_v13 = vcombine.low %v1037_v56, %v1045_v57  ;;  %v1047_v60 = vcombine.high %v1021_v54, %v1029_v55  ;;  %v1063_v12 = vcombine.high %v1037_v56, %v1045_v57 }
 0x452   :  { %v1054_v62 = vrot.slane %v1046_v59, %v6785_v37  ;;  %v1070_v14 = vrot.slane %v1062_v13, %v6785_v37  ;;  %v1061_v0 = vrot.slane %v1047_v60, %v6785_v37  ;;  %v1077_v40 = vrot.slane %v1063_v12, %v6785_v37 }
 0x454   :  { %v1078_v51 = vcombine.low %v1054_v62, %v1070_v14  ;;  %v1079_v52 = vcombine.high %v1054_v62, %v1070_v14  ;;  %v1080_v48 = vcombine.low %v1061_v0, %v1077_v40  ;;  %v1081_v4 = vcombine.high %v1061_v0, %v1077_v40 }
 0x456   :  { %6108 = vmatpush3.msra.mxu0 %v1078_v51  ;;  %6113 = vmatpush3.msra.mxu1 %v1079_v52 }
 0x457   :  { %6110 = vmatmul.mubr.msk.f32.vlgmr.msra.gmra.mrb[10].mxu0 %vm1082_vm2, %v1775_v2  ;;  %6115 = vmatmul.mubr.msk.f32.vlgmr.msra.gmra.mrb[16].mxu1 %vm1082_vm2, %v1776_v3 }
 0x458   :  { %6117 = vmatprep.subr.mxu0 %v6579_v19  ;;  %6122 = vmatprep.subr.mxu1 %v6579_v19 }
 0x459   :  { %6118 = vmatpush3.msra.mxu0 %v1080_v48  ;;  %6123 = vmatpush3.msra.mxu1 %v1081_v4 }
 0x45a   :  { %6119 = vmatprep.mubr.msk.f32.mxu0 %vm6581_vm1, %v6579_v19  ;;  %6124 = vmatprep.mubr.msk.f32.mxu1 %vm6581_vm1, %v6579_v19 }
 0x45b   :  { %6120 = vmatmul.mubr.msk.f32.vlgmr.msra.gmra.mrb[12].mxu0 %vm1082_vm2, %v1777_v6  ;;  %6125 = vmatmul.mubr.msk.f32.vlgmr.msra.gmra.mrb[18].mxu1 %vm1082_vm2, %v1778_v7 }
 0x50b   :  { %v1848_v23 = vpop.f32.mrb[6].mxu0 }
 0x50c   :  { %v6091_v34 = vpop.f32.mrb[7].mxu0 }
 0x50f   :  { %v1921_v8 = vpop.f32.mrb[12].mxu1 }
 0x510   :  { %v1994_v9 = vpop.f32.mrb[8].mxu0  ;;  %v6096_v17 = vpop.f32.mrb[13].mxu1 }
 0x511   :  { %v2363_v46 = vcombine.low %v1848_v23, %v1994_v9  ;;  %v2364_v16 = vcombine.high %v1848_v23, %v1994_v9  ;;  %v6101_v58 = vpop.f32.mrb[9].mxu0  ;;  %v108_v9 = vld [vmem:[%s7592_s3] sm:$0xff]  ;;  %v109_v17 = vld [vmem:[%s7592_s3 + $0x8] sm:$0xff] }
 0x513   :  { %v2371_v20 = vrot.slane %v2363_v46, %v6775_v29  ;;  %v2378_v49 = vrot.slane %v2364_v16, %v6775_v29  ;;  %v6289_v46 = vpack.c.bf16 %v109_v17, %v108_v9 }
 0x515   :  { %6290 = vmatprep.subr.bf16.mxu0 %v6289_v46 }
 0x516   :  { %6292 = vmatpush3.bf16.msra.mxu0 %v6289_v46 }
 0x518   :  { %v2067_v18 = vpop.f32.mrb[14].mxu1 }
 0x519   :  { %v2379_v10 = vcombine.low %v1921_v8, %v2067_v18  ;;  %v2380_v11 = vcombine.high %v1921_v8, %v2067_v18  ;;  %v6106_v41 = vpop.f32.mrb[15].mxu1 }
 0x51b   :  { %v2387_v21 = vrot.slane %v2379_v10, %v6775_v29  ;;  %v2394_v22 = vrot.slane %v2380_v11, %v6775_v29 }
 0x51d   :  { %v2395_v5 = vcombine.low %v2371_v20, %v2387_v21  ;;  %v2396_v24 = vcombine.high %v2371_v20, %v2387_v21  ;;  %v2411_v25 = vcombine.low %v2378_v49, %v2394_v22  ;;  %v2412_v26 = vcombine.high %v2378_v49, %v2394_v22  ;;  %v110_v21 = vld [vmem:[%s7592_s3 + $0x10] sm:$0xff]  ;;  %v111_v22 = vld [vmem:[%s7592_s3 + $0x18] sm:$0xff] }
 0x51f   :  { %v2403_v27 = vrot.slane %v2395_v5, %v6785_v37  ;;  %v2410_v30 = vrot.slane %v2396_v24, %v6785_v37  ;;  %v2419_v31 = vrot.slane %v2411_v25, %v6785_v37  ;;  %v2426_v32 = vrot.slane %v2412_v26, %v6785_v37 }
 0x520   :  { %v6293_v5 = vpack.c.bf16 %v111_v22, %v110_v21  ;;  %v102_v22 = vld [vmem:[#allocation5] sm:$0xff] }
 0x521   :  { %v2499_v33 = vcombine.low %v2403_v27, %v2410_v30  ;;  %v5859_v28 = vcombine.high %v2403_v27, %v2410_v30  ;;  %v2515_v35 = vcombine.low %v2419_v31, %v2426_v32  ;;  %v5860_v36 = vcombine.high %v2419_v31, %v2426_v32 }
 0x522   :  { %6294 = vmatprep.subr.bf16.mxu0 %v6293_v5 }
 0x523   :  { %v2506_v38 = vrot.slane %v2499_v33, %v6775_v29  ;;  %v2514_v39 = vrot.slane %v5859_v28, %v6775_v29  ;;  %v2522_v44 = vrot.slane %v2515_v35, %v6775_v29  ;;  %v2530_v45 = vrot.slane %v5860_v36, %v6775_v29  ;;  %6296 = vmatpush3.bf16.msra.mxu0 %v6293_v5 }
 0x525   :  { %v2531_v47 = vcombine.low %v2506_v38, %v2514_v39  ;;  %v2547_v42 = vcombine.low %v2522_v44, %v2530_v45  ;;  %v2532_v43 = vcombine.high %v2506_v38, %v2514_v39  ;;  %v2548_v50 = vcombine.high %v2522_v44, %v2530_v45 }
 0x527   :  { %v7068_v53 = vrot.slane %v2531_v47, %v6785_v37  ;;  %v7071_v54 = vrot.slane %v2547_v42, %v6785_v37  ;;  %v2546_v55 = vrot.slane %v2532_v43, %v6785_v37  ;;  %v2562_v56 = vrot.slane %v2548_v50, %v6785_v37 }
 0x529   :  { %v2564_v57 = vcombine.high %v7068_v53, %v7071_v54  ;;  %v2563_v15 = vcombine.low %v7068_v53, %v7071_v54  ;;  %v2565_v59 = vcombine.low %v2546_v55, %v2562_v56  ;;  %v2566_v13 = vcombine.high %v2546_v55, %v2562_v56  ;;  %v5863_v53 = vld [vmem:[%s7597_s8 + $0x2] ss:$0 sm:$0xff] }
 0x52a   :  { %v2140_v60 = vpop.f32.mrb[10].mxu0  ;;  %v2213_v12 = vpop.f32.mrb[16].mxu1 }
 0x52b   :  { %2637 = vrot.lane.b32.xlu0 %v2564_v57, %s6572_s22  ;;  %v6111_v61 = vpop.f32.mrb[11].mxu0  ;;  %v6116_v62 = vpop.f32.mrb[17].mxu1 }
 0x52e   :  { %v2286_v14 = vpop.f32.mrb[12].mxu0  ;;  %v2359_v63 = vpop.f32.mrb[18].mxu1 }
 0x52f   :  { %v2431_v0 = vcombine.low %v2140_v60, %v2286_v14  ;;  %v2432_v40 = vcombine.high %v2140_v60, %v2286_v14  ;;  %v2447_v51 = vcombine.low %v2213_v12, %v2359_v63  ;;  %v2448_v52 = vcombine.high %v2213_v12, %v2359_v63  ;;  %2645 = vrot.lane.b32.xlu0 %v2565_v59, %s6584_s29  ;;  %v6121_v1 = vpop.f32.mrb[13].mxu0  ;;  %v6126_v2 = vpop.f32.mrb[19].mxu1 }
 0x531   :  { %v2439_v3 = vrot.slane %v2431_v0, %v6775_v29  ;;  %v2446_v48 = vrot.slane %v2432_v40, %v6775_v29  ;;  %v2455_v4 = vrot.slane %v2447_v51, %v6775_v29  ;;  %v2462_v6 = vrot.slane %v2448_v52, %v6775_v29  ;;  %v6449_v0 = vld [vmem:[#allocation2 + $0x8] sm:$0xff]  ;;  %v6450_v51 = vld [vmem:[#allocation2] sm:$0xff] }
 0x533   :  { %v2463_v7 = vcombine.low %v2439_v3, %v2455_v4  ;;  %v2464_v23 = vcombine.high %v2439_v3, %v2455_v4  ;;  %v2479_v34 = vcombine.low %v2446_v48, %v2462_v6  ;;  %v2480_v8 = vcombine.high %v2446_v48, %v2462_v6  ;;  %2653 = vrot.lane.b32.xlu0 %v2566_v13, %s6585_s30  ;;  %v2793_v3 = vld [vmem:[%s7593_s4] sm:$0xff]  ;;  %v2794_v48 = vld [vmem:[%s7593_s4 + $0x8] sm:$0xff] }
 0x534   :  { %v6363_v4 = vpack.i.bf16 %v2794_v48, %v2793_v3  ;;  %v6297_v5 = vpack.c.bf16 %v2794_v48, %v2793_v3 }
 0x535   :  { %v2471_v16 = vrot.slane %v2463_v7, %v6785_v37  ;;  %v2478_v58 = vrot.slane %v2464_v23, %v6785_v37  ;;  %v2487_v18 = vrot.slane %v2479_v34, %v6785_v37  ;;  %v2494_v10 = vrot.slane %v2480_v8, %v6785_v37 }
 0x536   :  { %6298 = vmatprep.subr.bf16.mxu1 %v6297_v5 }
 0x537   :  { %v2567_v11 = vcombine.low %v2471_v16, %v2478_v58  ;;  %v5861_v41 = vcombine.high %v2471_v16, %v2478_v58  ;;  %v2583_v20 = vcombine.low %v2487_v18, %v2494_v10  ;;  %v5862_v49 = vcombine.high %v2487_v18, %v2494_v10  ;;  %v2795_v10 = vld [vmem:[%s7593_s4 + $0x10] sm:$0xff]  ;;  %6300 = vmatpush3.bf16.msra.mxu1 %v6297_v5 }
 0x539   :  { %v2574_v24 = vrot.slane %v2567_v11, %v6775_v29  ;;  %v2582_v25 = vrot.slane %v5861_v41, %v6775_v29  ;;  %v2590_v26 = vrot.slane %v2583_v20, %v6775_v29  ;;  %v2598_v27 = vrot.slane %v5862_v49, %v6775_v29  ;;  %v2796_v11 = vld [vmem:[%s7593_s4 + $0x18] sm:$0xff] }
 0x53a   :  { %v6368_v21 = vpack.i.bf16 %v2796_v11, %v2795_v10 }
 0x53b   :  { %v2599_v30 = vcombine.low %v2574_v24, %v2582_v25  ;;  %v2615_v31 = vcombine.low %v2590_v26, %v2598_v27  ;;  %v2600_v32 = vcombine.high %v2574_v24, %v2582_v25  ;;  %v2616_v33 = vcombine.high %v2590_v26, %v2598_v27  ;;  %v5868_v25 = vld [vmem:[%s7597_s8 + $0x1] ss:$0 sm:$0xff] }
 0x53c   :  { %v6301_v24 = vpack.c.bf16 %v2796_v11, %v2795_v10 }
 0x53d   :  { %v2607_v28 = vrot.slane %v2599_v30, %v6785_v37  ;;  %v2623_v35 = vrot.slane %v2615_v31, %v6785_v37  ;;  %v2614_v36 = vrot.slane %v2600_v32, %v6785_v37  ;;  %v2630_v38 = vrot.slane %v2616_v33, %v6785_v37 }
 0x53e   :  { %6302 = vmatprep.subr.bf16.mxu1 %v6301_v24 }
 0x53f   :  { %v2632_v39 = vcombine.high %v2607_v28, %v2623_v35  ;;  %v2631_v44 = vcombine.low %v2607_v28, %v2623_v35  ;;  %v2633_v45 = vcombine.low %v2614_v36, %v2630_v38  ;;  %v2634_v47 = vcombine.high %v2614_v36, %v2630_v38  ;;  %6304 = vmatpush3.bf16.msra.mxu1 %v6301_v24 }
 0x540   :  { %6160 = vmatprep.subr.mxu1 %v6579_v19 }
 0x541   :  { %2639 = vrot.lane.b32.xlu1 %v2632_v39, %s6572_s22  ;;  %v103_v39 = vld [vmem:[#allocation5 + $0x8] sm:$0xff] }
 0x545   :  { %2647 = vrot.lane.b32.xlu1 %v2633_v45, %s6584_s29 }
 0x549   :  { %2655 = vrot.lane.b32.xlu1 %v2634_v47, %s6585_s30  ;;  %v5866_v47 = vld [vmem:[%s7597_s8 + $0x6] ss:$0 sm:$0xff] }
 0x59d   :  { %v2638_v42 = vpop.permute.xlu0 %2637 }
 0x59e   :  { %v2659_v50 = vsel %vm1082_vm2, %v2563_v15, %v2638_v42 }
 0x5a1   :  { %v2646_v43 = vpop.permute.xlu0 %2645 }
 0x5a2   :  { %v2662_v55 = vsel %vm2661_vm3, %v2659_v50, %v2646_v43 }
 0x5a5   :  { %v2654_v56 = vpop.permute.xlu0 %2653 }
 0x5a6   :  { %v2665_v57 = vsel %vm2664_vm4, %v2662_v55, %v2654_v56  ;;  %v5867_v55 = vld [vmem:[%s7597_s8 + $0x7] ss:$0 sm:$0xff] }
 0x5a7   :  { %6135 = vmatprep.mubr.msk.f32.mxu0 %vm116_vm0, %v2665_v57 }
 0x5b3   :  { %v2640_v59 = vpop.permute.xlu1 %2639 }
 0x5b4   :  { %v2660_v60 = vsel %vm1082_vm2, %v2631_v44, %v2640_v59 }
 0x5b7   :  { %v2648_v13 = vpop.permute.xlu1 %2647 }
 0x5b8   :  { %v2663_v12 = vsel %vm2661_vm3, %v2660_v60, %v2648_v13 }
 0x5bb   :  { %v2656_v61 = vpop.permute.xlu1 %2655 }
 0x5bc   :  { %v2666_v62 = vsel %vm2664_vm4, %v2663_v12, %v2656_v61 }
 0x5bd   :  { %6136 = vmatmul.mubr.msk.f32.vlgmr.msra.gmra.mrb[14].mxu0 %vm116_vm0, %v2666_v62 }
 0x5be   :  { %6157 = vmatprep.mubr.msk.f32.mxu0 %vm116_vm0, %v102_v22 }
 0x690   :  { %v6137_v54 = vpop.f32.mrb[14].mxu0 }
 0x691   :  { %v2749_v15 = vadd.f32 %v6137_v54, %v5863_v53  ;;  %v2743_v14 = vpop.f32.mrb[15].mxu0 }
 0x692   :  { %v2744_v63 = vadd.f32 %v5863_v53, %v2743_v14 }
 0x693   :  { %v2753_v40 = vadd.f32 %v6449_v0, %v2749_v15 }
 0x694   :  { %v2752_v52 = vadd.f32 %v6450_v51, %v2744_v63 }
 0x695   :  { %v2757_v1 = vsel %vm116_vm0, %v2753_v40, 0.0 }
 0x696   :  { %2758 = vadd.xlane.f32.xlu1 %v2757_v1  ;;  %v2754_v2 = vsel %vm116_vm0, %v2752_v52, 0.0 }
 0x697   :  { %2755 = vadd.xlane.f32.xlu0 %v2754_v2 }
 0x6a7   :  { %6364 = vrot.lane.b32.xlu1 %v6363_v4, %s6578_s27 }
 0x6ab   :  { %2903 = vrot.lane.b32.xlu1 %v5868_v25, %s6578_s27 }
 0x723   :  { %v2759_v6 = vpop.xlane.xlu1 %2758 }
 0x724   :  { %v2762_v7 = vmul.f32 0.03125, %v2759_v6  ;;  %v2756_v23 = vpop.xlane.xlu0 %2755 }
 0x725   :  { %v2761_v34 = vmul.f32 0.03125, %v2756_v23 }
 0x726   :  { %v2764_v8 = vsub.f32 %v2753_v40, %v2762_v7 }
 0x727   :  { %v2763_v9 = vsub.f32 %v2752_v52, %v2761_v34  ;;  %v6365_v18 = vpop.permute.xlu1 %6364 }
 0x728   :  { %v2766_v17 = vmul.f32 %v2764_v8, %v2764_v8  ;;  %v6367_v41 = vunpack.i.h.bf16 %v6365_v18  ;;  %v6366_v20 = vunpack.i.l.bf16 %v6365_v18 }
 0x729   :  { %v2765_v16 = vmul.f32 %v2763_v9, %v2763_v9 }
 0x72a   :  { %v2770_v46 = vsel %vm116_vm0, %v2766_v17, 0.0  ;;  %v6305_v49 = vpack.c.bf16 %v6367_v41, %v6366_v20 }
 0x72b   :  { %2771 = vadd.xlane.f32.xlu0 %v2770_v46  ;;  %v2767_v58 = vsel %vm116_vm0, %v2765_v16, 0.0  ;;  %v2904_v13 = vpop.permute.xlu1 %2903 }
 0x72c   :  { %6306 = vmatprep.subr.bf16.mxu0 %v6305_v49 }
 0x72d   :  { %6308 = vmatpush3.bf16.msra.mxu0 %v6305_v49 }
 0x72f   :  { %2768 = vadd.xlane.f32.xlu0 %v2767_v58 }
 0x745   :  { %6369 = vrot.lane.b32.xlu0 %v6368_v21, %s6578_s27 }
 0x7b8   :  { %v2772_v26 = vpop.xlane.xlu0 %2771 }
 0x7b9   :  { %v2774_v27 = vmul.f32 0.03125, %v2772_v26 }
 0x7bb   :  { %v2776_v30 = vadd.f32 1e-05, %v2774_v27 }
 0x7bc   :  { %v2769_v31 = vpop.xlane.xlu0 %2768 }
 0x7bd   :  { %6405 = vrsqrt.f32 %v2776_v30  ;;  %v2773_v32 = vmul.f32 0.03125, %v2769_v31 }
 0x7bf   :  { %v2775_v33 = vadd.f32 1e-05, %v2773_v32 }
 0x7c0   :  { %v6370_v28 = vpop.permute.xlu0 %6369 }
 0x7c1   :  { %6407 = vrsqrt.f32 %v2775_v33  ;;  %v6372_v35 = vunpack.i.h.bf16 %v6370_v28  ;;  %v6371_v36 = vunpack.i.l.bf16 %v6370_v28 }
 0x7c3   :  { %v6309_v38 = vpack.c.bf16 %v6372_v35, %v6371_v36 }
 0x7c5   :  { %6310 = vmatprep.subr.bf16.mxu0 %v6309_v38 }
 0x7c6   :  { %6312 = vmatpush3.bf16.msra.mxu0 %v6309_v38 }
 0x7c7   :  { %v6406_v44 = vpop.eup %6405  ;;  %6170 = vmatprep.subr.mxu0 %v6579_v19 }
 0x7c8   :  { %v2780_v45 = vmul.f32 %v6406_v44, %v2764_v8 }
 0x7c9   :  { %6158 = vmatmul.mubr.msk.f32.vlgmr.msra.gmra.mrb[16].mxu0 %vm116_vm0, %v103_v39 }
 0x7ca   :  { %6172 = vmatprep.mubr.msk.f32.mxu0 %vm6581_vm1, %v6579_v19  ;;  %v2786_v50 = vmul.f32 %v5866_v47, %v2780_v45 }
 0x7cb   :  { %v6408_v42 = vpop.eup %6407 }
 0x7cc   :  { %v2779_v43 = vmul.f32 %v6408_v42, %v2763_v9  ;;  %v7163_v59 = vadd.f32 %v5867_v55, %v2786_v50 }
 0x7ce   :  { %v2785_v56 = vmul.f32 %v5866_v47, %v2779_v43 }
 0x7d0   :  { %v7161_v57 = vadd.f32 %v5867_v55, %v2785_v56 }
 0x7d2   :  { %6146 = vmatprep.mubr.msk.f32.mxu1 %vm116_vm0, %v7161_v57 }
 0x7d3   :  { %6147 = vmatmul.mubr.msk.f32.vlgmr.msra.gmra.mrb[20].mxu1 %vm116_vm0, %v7163_v59 }
 0x7d4   :  { %6162 = vmatprep.mubr.msk.f32.mxu1 %vm6581_vm1, %v6579_v19 }
 0x89c   :  { %v6159_v60 = vpop.f32.mrb[16].mxu0 }
 0x89d   :  { %v2978_v12 = vpop.f32.mrb[17].mxu0  ;;  %v7176_v15 = vadd.f32 %v6159_v60, %v2904_v13 }
 0x89e   :  { %v2979_v61 = vadd.f32 %v2978_v12, %v2904_v13 }
 0x8a0   :  { %3287 = vrot.lane.b32.xlu0 %v2979_v61, %s6577_s12  ;;  %3281 = vrot.lane.b32.xlu1 %v2979_v61, %s6576_s2 }
 0x8a4   :  { %3293 = vrot.lane.b32.xlu1 %v2979_v61, %s6575_s0 }
 0x8a6   :  { %v6148_v62 = vpop.f32.mrb[20].mxu1 }
 0x8a7   :  { %v2877_v53 = vpop.f32.mrb[21].mxu1  ;;  %v7185_v14 = vadd.f32 %v6148_v62, %v5868_v25 }
 0x8a8   :  { %v2878_v54 = vadd.f32 %v5868_v25, %v2877_v53 }
 0x8aa   :  { %2995 = vrot.lane.b32.xlu1 %v2878_v54, %s6577_s12  ;;  %2989 = vrot.lane.b32.xlu0 %v2878_v54, %s6576_s2 }
 0x8ae   :  { %3283 = vrot.lane.b32.xlu1 %v7176_v15, %s6576_s2  ;;  %3001 = vrot.lane.b32.xlu0 %v2878_v54, %s6575_s0 }
 0x8b2   :  { %3295 = vrot.lane.b32.xlu1 %v7176_v15, %s6575_s0  ;;  %3289 = vrot.lane.b32.xlu0 %v7176_v15, %s6577_s12 }
 0x8b6   :  { %2997 = vrot.lane.b32.xlu1 %v7185_v14, %s6577_s12  ;;  %2991 = vrot.lane.b32.xlu0 %v7185_v14, %s6576_s2 }
 0x8ba   :  { %3003 = vrot.lane.b32.xlu0 %v7185_v14, %s6575_s0 }
 0x8be   :  { %3571 = vrot.lane.b32.xlu0 %v2979_v61, %s6578_s27 }
 0x912   :  { %v3288_v63 = vpop.permute.xlu0 %3287  ;;  %v3282_v0 = vpop.permute.xlu1 %3281 }
 0x913   :  { %3575 = vrot.lane.b32.xlu1 %v3282_v0, %s6578_s27  ;;  %v3299_v40 = vcombine.low %v2979_v61, %v3288_v63  ;;  %v3300_v51 = vcombine.high %v2979_v61, %v3288_v63 }
 0x915   :  { %v3307_v3 = vrot.slane %v3299_v40, %v6775_v29  ;;  %v3314_v48 = vrot.slane %v3300_v51, %v6775_v29 }
 0x916   :  { %v3294_v52 = vpop.permute.xlu1 %3293 }
 0x917   :  { %v3315_v1 = vcombine.low %v3282_v0, %v3294_v52  ;;  %v3316_v2 = vcombine.high %v3282_v0, %v3294_v52  ;;  %3579 = vrot.lane.b32.xlu1 %v3288_v63, %s6578_s27  ;;  %3583 = vrot.lane.b32.xlu0 %v3294_v52, %s6578_s27 }
 0x919   :  { %v3323_v4 = vrot.slane %v3315_v1, %v6775_v29  ;;  %v3330_v6 = vrot.slane %v3316_v2, %v6775_v29 }
 0x91b   :  { %v3331_v7 = vcombine.low %v3307_v3, %v3323_v4  ;;  %v3332_v23 = vcombine.high %v3307_v3, %v3323_v4  ;;  %v3347_v34 = vcombine.low %v3314_v48, %v3330_v6  ;;  %v3348_v8 = vcombine.high %v3314_v48, %v3330_v6 }
 0x91c   :  { %v2996_v9 = vpop.permute.xlu1 %2995  ;;  %v2990_v17 = vpop.permute.xlu0 %2989 }
 0x91d   :  { %v3339_v46 = vrot.slane %v3331_v7, %v6785_v37  ;;  %v3346_v16 = vrot.slane %v3332_v23, %v6785_v37  ;;  %v3355_v58 = vrot.slane %v3347_v34, %v6785_v37  ;;  %v3362_v18 = vrot.slane %v3348_v8, %v6785_v37 }
 0x91e   :  { %v3007_v10 = vcombine.low %v2878_v54, %v2996_v9  ;;  %v3008_v11 = vcombine.high %v2878_v54, %v2996_v9 }
 0x91f   :  { %v3435_v41 = vcombine.low %v3339_v46, %v3346_v16  ;;  %v5877_v20 = vcombine.high %v3339_v46, %v3346_v16  ;;  %v3451_v49 = vcombine.low %v3355_v58, %v3362_v18  ;;  %v5878_v21 = vcombine.high %v3355_v58, %v3362_v18 }
 0x920   :  { %v7205_v22 = vpop.permute.xlu1 %3283  ;;  %v3002_v5 = vpop.permute.xlu0 %3001  ;;  %v3015_v33 = vrot.slane %v3007_v10, %v6775_v29  ;;  %v3022_v28 = vrot.slane %v3008_v11, %v6775_v29 }
 0x921   :  { %v7208_v24 = vrot.slane %v3435_v41, %v6775_v29  ;;  %v7211_v25 = vrot.slane %v5877_v20, %v6775_v29  ;;  %v7214_v26 = vrot.slane %v3451_v49, %v6775_v29  ;;  %v7217_v27 = vrot.slane %v5878_v21, %v6775_v29 }
 0x922   :  { %v3023_v30 = vcombine.low %v2990_v17, %v3002_v5  ;;  %v3024_v31 = vcombine.high %v2990_v17, %v3002_v5 }
 0x923   :  { %v3467_v32 = vcombine.low %v7208_v24, %v7211_v25  ;;  %v3468_v35 = vcombine.high %v7208_v24, %v7211_v25  ;;  %v3483_v36 = vcombine.low %v7214_v26, %v7217_v27  ;;  %v3484_v49 = vcombine.high %v7214_v26, %v7217_v27 }
 0x924   :  { %v3031_v38 = vrot.slane %v3023_v30, %v6775_v29  ;;  %v3038_v39 = vrot.slane %v3024_v31, %v6775_v29  ;;  %v7229_v44 = vpop.permute.xlu1 %3295  ;;  %v7231_v45 = vpop.permute.xlu0 %3289 }
 0x925   :  { %v3383_v47 = vcombine.low %v7205_v22, %v7229_v44  ;;  %v3384_v42 = vcombine.high %v7205_v22, %v7229_v44  ;;  %v3367_v43 = vcombine.low %v7176_v15, %v7231_v45  ;;  %v3368_v50 = vcombine.high %v7176_v15, %v7231_v45 }
 0x926   :  { %v3039_v55 = vcombine.low %v3015_v33, %v3031_v38  ;;  %v3040_v56 = vcombine.high %v3015_v33, %v3031_v38  ;;  %v3055_v13 = vcombine.low %v3022_v28, %v3038_v39  ;;  %v3056_v60 = vcombine.high %v3022_v28, %v3038_v39 }
 0x927   :  { %v3391_v12 = vrot.slane %v3383_v47, %v6775_v29  ;;  %v3398_v61 = vrot.slane %v3384_v42, %v6775_v29  ;;  %v3375_v62 = vrot.slane %v3367_v43, %v6775_v29  ;;  %v3382_v53 = vrot.slane %v3368_v50, %v6775_v29 }
 0x928   :  { %v3047_v54 = vrot.slane %v3039_v55, %v6785_v37  ;;  %v3054_v63 = vrot.slane %v3040_v56, %v6785_v37  ;;  %v3063_v0 = vrot.slane %v3055_v13, %v6785_v37  ;;  %v3070_v40 = vrot.slane %v3056_v60, %v6785_v37  ;;  %v2992_v7 = vpop.permute.xlu0 %2991  ;;  %v2998_v20 = vpop.permute.xlu1 %2997 }
 0x929   :  { %v3399_v51 = vcombine.low %v3375_v62, %v3391_v12  ;;  %v3400_v52 = vcombine.high %v3375_v62, %v3391_v12  ;;  %v3415_v1 = vcombine.low %v3382_v53, %v3398_v61  ;;  %v3416_v2 = vcombine.high %v3382_v53, %v3398_v61 }
 0x92a   :  { %v3143_v3 = vcombine.low %v3047_v54, %v3054_v63  ;;  %v5873_v48 = vcombine.high %v3047_v54, %v3054_v63  ;;  %v3159_v4 = vcombine.low %v3063_v0, %v3070_v40  ;;  %v5874_v6 = vcombine.high %v3063_v0, %v3070_v40 }
 0x92b   :  { %v3407_v23 = vrot.slane %v3399_v51, %v6785_v37  ;;  %v3414_v34 = vrot.slane %v3400_v52, %v6785_v37  ;;  %v3423_v8 = vrot.slane %v3415_v1, %v6785_v37  ;;  %v3430_v9 = vrot.slane %v3416_v2, %v6785_v37 }
 0x92c   :  { %v3150_v17 = vrot.slane %v3143_v3, %v6775_v29  ;;  %v3158_v46 = vrot.slane %v5873_v48, %v6775_v29  ;;  %v3166_v16 = vrot.slane %v3159_v4, %v6775_v29  ;;  %v3174_v58 = vrot.slane %v5874_v6, %v6775_v29  ;;  %v3004_v39 = vpop.permute.xlu0 %3003 }
 0x92d   :  { %v3503_v18 = vcombine.low %v3407_v23, %v3414_v34  ;;  %v5879_v10 = vcombine.high %v3407_v23, %v3414_v34  ;;  %v3519_v11 = vcombine.low %v3423_v8, %v3430_v9  ;;  %v5880_v41 = vcombine.high %v3423_v8, %v3430_v9 }
 0x92e   :  { %v3175_v21 = vcombine.low %v3150_v17, %v3158_v46  ;;  %v3176_v5 = vcombine.high %v3150_v17, %v3158_v46  ;;  %v3191_v24 = vcombine.low %v3166_v16, %v3174_v58  ;;  %v3192_v28 = vcombine.high %v3166_v16, %v3174_v58 }
 0x92f   :  { %v7260_v25 = vrot.slane %v3503_v18, %v6775_v29  ;;  %v7263_v30 = vrot.slane %v5879_v10, %v6775_v29  ;;  %v7266_v31 = vrot.slane %v3519_v11, %v6775_v29  ;;  %v7269_v33 = vrot.slane %v5880_v41, %v6775_v29 }
 0x930   :  { %v3075_v38 = vcombine.low %v7185_v14, %v2998_v20  ;;  %v3475_v26 = vrot.slane %v3467_v32, %v6785_v37  ;;  %v3491_v27 = vrot.slane %v3483_v36, %v6785_v37  ;;  %v3076_v47 = vcombine.high %v7185_v14, %v2998_v20 }
 0x931   :  { %v3535_v42 = vcombine.low %v7260_v25, %v7263_v30  ;;  %v3551_v43 = vcombine.low %v7266_v31, %v7269_v33  ;;  %v3482_v55 = vrot.slane %v3468_v35, %v6785_v37  ;;  %v3498_v56 = vrot.slane %v3484_v49, %v6785_v37 }
 0x932   :  { %v3499_v50 = vcombine.low %v3475_v26, %v3491_v27  ;;  %v3091_v13 = vcombine.low %v2992_v7, %v3004_v39  ;;  %v3092_v60 = vcombine.high %v2992_v7, %v3004_v39  ;;  %v3183_v32 = vrot.slane %v3175_v21, %v6785_v37 }
 0x933   :  { %v3083_v36 = vrot.slane %v3075_v38, %v6775_v29  ;;  %v3199_v14 = vrot.slane %v3191_v24, %v6785_v37  ;;  %v3190_v12 = vrot.slane %v3176_v5, %v6785_v37  ;;  %v3206_v61 = vrot.slane %v3192_v28, %v6785_v37 }
 0x934   :  { %6161 = vmatpush3.xpose.msk.msra.mxu1 %vm1082_vm2, %v3499_v50  ;;  %v3090_v62 = vrot.slane %v3076_v47, %v6775_v29  ;;  %v3501_v53 = vcombine.low %v3482_v55, %v3498_v56  ;;  %v3099_v35 = vrot.slane %v3091_v13, %v6775_v29  ;;  %v3106_v54 = vrot.slane %v3092_v60, %v6775_v29  ;;  %v3572_v13 = vpop.permute.xlu0 %3571 }
 0x935   :  { %6165 = vmatprep.subr.mxu1 %v6579_v19  ;;  %v3207_v63 = vcombine.low %v3183_v32, %v3199_v14  ;;  %v3500_v0 = vcombine.high %v3475_v26, %v3491_v27  ;;  %v3209_v40 = vcombine.low %v3190_v12, %v3206_v61  ;;  %v3543_v51 = vrot.slane %v3535_v42, %v6785_v37 }
 0x936   :  { %6171 = vmatpush3.xpose.msk.msra.mxu0 %vm1082_vm2, %v3501_v53  ;;  %v3107_v52 = vcombine.low %v3083_v36, %v3099_v35  ;;  %v3108_v1 = vcombine.high %v3083_v36, %v3099_v35  ;;  %v3123_v2 = vcombine.low %v3090_v62, %v3106_v54  ;;  %v3124_v3 = vcombine.high %v3090_v62, %v3106_v54 }
 0x937   :  { %6163 = vmatmul.mubr.msk.f32.vlgmr.msra.gmra.mrb[22].mxu1 %vm1082_vm2, %v3207_v63  ;;  %6180 = vmatprep.subr.mxu0 %v6579_v19  ;;  %v3559_v48 = vrot.slane %v3551_v43, %v6785_v37  ;;  %v3208_v34 = vcombine.high %v3183_v32, %v3199_v14  ;;  %v3502_v8 = vcombine.high %v3482_v55, %v3498_v56 }
 0x938   :  { %v3115_v4 = vrot.slane %v3107_v52, %v6785_v37  ;;  %v3122_v6 = vrot.slane %v3108_v1, %v6785_v37  ;;  %v3131_v7 = vrot.slane %v3123_v2, %v6785_v37  ;;  %v3138_v23 = vrot.slane %v3124_v3, %v6785_v37  ;;  %6166 = vmatpush3.xpose.msk.msra.mxu1 %vm1082_vm2, %v3500_v0 }
 0x939   :  { %6173 = vmatmul.mubr.msk.f32.vlgmr.msra.gmra.mrb[18].mxu0 %vm1082_vm2, %v3209_v40  ;;  %6167 = vmatprep.mubr.msk.f32.mxu1 %vm6581_vm1, %v6579_v19  ;;  %v3567_v9 = vcombine.low %v3543_v51, %v3559_v48  ;;  %v3536_v18 = vcombine.high %v7260_v25, %v7263_v30  ;;  %v3552_v10 = vcombine.high %v7266_v31, %v7269_v33 }
 0x93a   :  { %v3211_v17 = vcombine.low %v3115_v4, %v3122_v6  ;;  %v5875_v46 = vcombine.high %v3115_v4, %v3122_v6  ;;  %v3227_v16 = vcombine.low %v3131_v7, %v3138_v23  ;;  %v5876_v58 = vcombine.high %v3131_v7, %v3138_v23  ;;  %6175 = vmatprep.subr.mxu1 %v6579_v19 }
 0x93b   :  { %6168 = vmatmul.mubr.msk.f32.vlgmr.msra.gmra.mrb[24].mxu1 %vm1082_vm2, %v3208_v34  ;;  %6181 = vmatpush3.xpose.msk.msra.mxu0 %vm1082_vm2, %v3567_v9  ;;  %v3210_v21 = vcombine.high %v3190_v12, %v3206_v61  ;;  %v3568_v5 = vcombine.high %v3543_v51, %v3559_v48  ;;  %v3550_v33 = vrot.slane %v3536_v18, %v6785_v37 }
 0x93c   :  { %v3218_v11 = vrot.slane %v3211_v17, %v6775_v29  ;;  %v3226_v41 = vrot.slane %v5875_v46, %v6775_v29  ;;  %v3234_v20 = vrot.slane %v3227_v16, %v6775_v29  ;;  %v3242_v49 = vrot.slane %v5876_v58, %v6775_v29  ;;  %6176 = vmatpush3.xpose.msk.msra.mxu1 %vm1082_vm2, %v3502_v8 }
 0x93d   :  { %6177 = vmatprep.mubr.msk.f32.mxu1 %vm6581_vm1, %v6579_v19  ;;  %6185 = vmatprep.subr.mxu1 %v6579_v19  ;;  %v3566_v28 = vrot.slane %v3552_v10, %v6785_v37 }
 0x93e   :  { %v3243_v24 = vcombine.low %v3218_v11, %v3226_v41  ;;  %v3244_v25 = vcombine.high %v3218_v11, %v3226_v41  ;;  %v3259_v30 = vcombine.low %v3234_v20, %v3242_v49  ;;  %v3260_v31 = vcombine.high %v3234_v20, %v3242_v49  ;;  %6182 = vmatprep.mubr.msk.f32.mxu0 %vm6581_vm1, %v6579_v19 }
 0x93f   :  { %6178 = vmatmul.mubr.msk.f32.vlgmr.msra.gmra.mrb[26].mxu1 %vm1082_vm2, %v3210_v21  ;;  %6190 = vmatprep.subr.mxu0 %v6579_v19  ;;  %v3569_v43 = vcombine.low %v3550_v33, %v3566_v28  ;;  %v3570_v50 = vcombine.high %v3550_v33, %v3566_v28 }
 0x940   :  { %6186 = vmatpush3.xpose.msk.msra.mxu1 %vm1082_vm2, %v3568_v5  ;;  %6187 = vmatprep.mubr.msk.f32.mxu1 %vm6581_vm1, %v6579_v19  ;;  %v3251_v38 = vrot.slane %v3243_v24, %v6785_v37  ;;  %v3267_v26 = vrot.slane %v3259_v30, %v6785_v37  ;;  %v3258_v47 = vrot.slane %v3244_v25, %v6785_v37 }
 0x941   :  { %6195 = vmatprep.subr.mxu1 %v6579_v19  ;;  %v3274_v42 = vrot.slane %v3260_v31, %v6785_v37 }
 0x942   :  { %v3275_v27 = vcombine.low %v3251_v38, %v3267_v26  ;;  %v3276_v39 = vcombine.high %v3251_v38, %v3267_v26 }
 0x943   :  { %v3277_v55 = vcombine.low %v3258_v47, %v3274_v42  ;;  %v3278_v56 = vcombine.high %v3258_v47, %v3274_v42 }
 0x944   :  { %6183 = vmatmul.mubr.msk.f32.vlgmr.msra.gmra.mrb[20].mxu0 %vm1082_vm2, %v3275_v27  ;;  %6188 = vmatmul.mubr.msk.f32.vlgmr.msra.gmra.mrb[28].mxu1 %vm1082_vm2, %v3276_v39 }
 0x945   :  { %6191 = vmatpush3.xpose.msk.msra.mxu0 %vm1082_vm2, %v3569_v43  ;;  %6196 = vmatpush3.xpose.msk.msra.mxu1 %vm1082_vm2, %v3570_v50 }
 0x946   :  { %6192 = vmatprep.mubr.msk.f32.mxu0 %vm6581_vm1, %v6579_v19  ;;  %6197 = vmatprep.mubr.msk.f32.mxu1 %vm6581_vm1, %v6579_v19 }
 0x947   :  { %6200 = vmatprep.subr.mxu0 %v6579_v19  ;;  %6205 = vmatprep.subr.mxu1 %v6579_v19 }
 0x948   :  { %6193 = vmatmul.mubr.msk.f32.vlgmr.msra.gmra.mrb[22].mxu0 %vm1082_vm2, %v3277_v55  ;;  %6198 = vmatmul.mubr.msk.f32.vlgmr.msra.gmra.mrb[30].mxu1 %vm1082_vm2, %v3278_v56 }
 0x949   :  { %6202 = vmatprep.mubr.msk.f32.mxu0 %vm6581_vm1, %v6579_v19  ;;  %6207 = vmatprep.mubr.msk.f32.mxu1 %vm6581_vm1, %v6579_v19 }
 0x985   :  { %v3576_v60 = vpop.permute.xlu1 %3575 }
 0x989   :  { %v3580_v32 = vpop.permute.xlu1 %3579  ;;  %v3584_v36 = vpop.permute.xlu0 %3583 }
 0x98a   :  { %v3595_v14 = vcombine.low %v3572_v13, %v3580_v32  ;;  %v3596_v12 = vcombine.high %v3572_v13, %v3580_v32  ;;  %v3611_v61 = vcombine.low %v3576_v60, %v3584_v36  ;;  %v3612_v62 = vcombine.high %v3576_v60, %v3584_v36 }
 0x98c   :  { %v3603_v53 = vrot.slane %v3595_v14, %v6775_v29  ;;  %v3610_v35 = vrot.slane %v3596_v12, %v6775_v29  ;;  %v3619_v54 = vrot.slane %v3611_v61, %v6775_v29  ;;  %v3626_v63 = vrot.slane %v3612_v62, %v6775_v29 }
 0x98e   :  { %v3627_v0 = vcombine.low %v3603_v53, %v3619_v54  ;;  %v3628_v40 = vcombine.high %v3603_v53, %v3619_v54  ;;  %v3643_v51 = vcombine.low %v3610_v35, %v3626_v63  ;;  %v3644_v52 = vcombine.high %v3610_v35, %v3626_v63 }
 0x990   :  { %v3635_v1 = vrot.slane %v3627_v0, %v6785_v37  ;;  %v3642_v2 = vrot.slane %v3628_v40, %v6785_v37  ;;  %v3651_v3 = vrot.slane %v3643_v51, %v6785_v37  ;;  %v3658_v48 = vrot.slane %v3644_v52, %v6785_v37 }
 0x992   :  { %v3731_v4 = vcombine.low %v3635_v1, %v3642_v2  ;;  %v5881_v6 = vcombine.high %v3635_v1, %v3642_v2  ;;  %v3747_v7 = vcombine.low %v3651_v3, %v3658_v48  ;;  %v5882_v23 = vcombine.high %v3651_v3, %v3658_v48 }
 0x994   :  { %v3738_v34 = vrot.slane %v3731_v4, %v6775_v29  ;;  %v3746_v8 = vrot.slane %v5881_v6, %v6775_v29  ;;  %v3754_v9 = vrot.slane %v3747_v7, %v6775_v29  ;;  %v3762_v17 = vrot.slane %v5882_v23, %v6775_v29 }
 0x996   :  { %v3763_v46 = vcombine.low %v3738_v34, %v3746_v8  ;;  %v3779_v16 = vcombine.low %v3754_v9, %v3762_v17  ;;  %v3764_v58 = vcombine.high %v3738_v34, %v3746_v8  ;;  %v3780_v18 = vcombine.high %v3754_v9, %v3762_v17 }
 0x998   :  { %v3771_v10 = vrot.slane %v3763_v46, %v6785_v37  ;;  %v3787_v11 = vrot.slane %v3779_v16, %v6785_v37  ;;  %v7364_v41 = vrot.slane %v3764_v58, %v6785_v37  ;;  %v7367_v20 = vrot.slane %v3780_v18, %v6785_v37 }
 0x99a   :  { %v3795_v49 = vcombine.low %v3771_v10, %v3787_v11  ;;  %v3796_v21 = vcombine.high %v3771_v10, %v3787_v11  ;;  %v3797_v5 = vcombine.low %v7364_v41, %v7367_v20  ;;  %v3798_v24 = vcombine.high %v7364_v41, %v7367_v20 }
 0x99c   :  { %6201 = vmatpush3.msra.mxu0 %v3795_v49  ;;  %6206 = vmatpush3.msra.mxu1 %v3796_v21 }
 0x99d   :  { %6210 = vmatprep.subr.mxu0 %v6579_v19  ;;  %6215 = vmatprep.subr.mxu1 %v6579_v19 }
 0xa0a   :  { %v3939_v25 = vpop.f32.mrb[22].mxu1 }
 0xa0b   :  { %v6164_v30 = vpop.f32.mrb[23].mxu1  ;;  %v4475_v31 = vsel %vm1082_vm2, %v3939_v25, -inf }
 0xa0c   :  { %v4091_v33 = vpop.f32.mrb[18].mxu0  ;;  %4476 = vmax.xlane.f32.xlu1 %v4475_v31 }
 0xa0d   :  { %v6174_v28 = vpop.f32.mrb[19].mxu0  ;;  %v4481_v38 = vsel %vm1082_vm2, %v4091_v33, -inf }
 0xa0e   :  { %4482 = vmax.xlane.f32.xlu0 %v4481_v38  ;;  %v4015_v26 = vpop.f32.mrb[24].mxu1 }
 0xa0f   :  { %v6169_v27 = vpop.f32.mrb[25].mxu1  ;;  %v4478_v39 = vsel %vm1082_vm2, %v4015_v26, -inf }
 0xa12   :  { %4479 = vmax.xlane.f32.xlu0 %v4478_v39  ;;  %v4167_v47 = vpop.f32.mrb[26].mxu1 }
 0xa13   :  { %v6179_v42 = vpop.f32.mrb[27].mxu1  ;;  %v4484_v43 = vsel %vm1082_vm2, %v4167_v47, -inf }
 0xa14   :  { %4485 = vmax.xlane.f32.xlu1 %v4484_v43 }
 0xa17   :  { %v4243_v50 = vpop.f32.mrb[20].mxu0  ;;  %v4319_v55 = vpop.f32.mrb[28].mxu1 }
 0xa18   :  { %v6184_v56 = vpop.f32.mrb[21].mxu0  ;;  %v6189_v13 = vpop.f32.mrb[29].mxu1  ;;  %v4490_v60 = vsel %vm1082_vm2, %v4319_v55, -inf  ;;  %v4487_v32 = vsel %vm1082_vm2, %v4243_v50, -inf }
 0xa19   :  { %4491 = vmax.xlane.f32.xlu1 %v4490_v60  ;;  %4488 = vmax.xlane.f32.xlu0 %v4487_v32 }
 0xa1b   :  { %v4395_v36 = vpop.f32.mrb[22].mxu0  ;;  %v4471_v14 = vpop.f32.mrb[30].mxu1 }
 0xa1c   :  { %v6194_v12 = vpop.f32.mrb[23].mxu0  ;;  %v6199_v61 = vpop.f32.mrb[31].mxu1  ;;  %v4496_v62 = vsel %vm1082_vm2, %v4471_v14, -inf  ;;  %v4493_v53 = vsel %vm1082_vm2, %v4395_v36, -inf }
 0xa1d   :  { %4497 = vmax.xlane.f32.xlu1 %v4496_v62  ;;  %4494 = vmax.xlane.f32.xlu0 %v4493_v53 }
 0xa2e   :  { %3577 = vrot.lane.b32.xlu1 %v7205_v22, %s6578_s27 }
 0xa33   :  { %3573 = vrot.lane.b32.xlu0 %v7176_v15, %s6578_s27 }
 0xa99   :  { %v4477_v35 = vpop.xlane.xlu1 %4476 }
 0xa9a   :  { %v4499_v54 = vsub.f32 %v3939_v25, %v4477_v35 }
 0xa9b   :  { %v4483_v63 = vpop.xlane.xlu0 %4482 }
 0xa9c   :  { %v4507_v0 = vmul.f32 1.442695, %v4499_v54  ;;  %v4501_v40 = vsub.f32 %v4091_v33, %v4483_v63 }
 0xa9e   :  { %6409 = vpow2.f32 %v4507_v0  ;;  %v4511_v51 = vmul.f32 1.442695, %v4501_v40 }
 0xa9f   :  { %v4480_v52 = vpop.xlane.xlu0 %4479 }
 0xaa0   :  { %6411 = vpow2.f32 %v4511_v51  ;;  %v4500_v1 = vsub.f32 %v4015_v26, %v4480_v52 }
 0xaa1   :  { %v4486_v2 = vpop.xlane.xlu1 %4485 }
 0xaa2   :  { %v4509_v3 = vmul.f32 1.442695, %v4500_v1  ;;  %v4502_v48 = vsub.f32 %v4167_v47, %v4486_v2 }
 0xaa4   :  { %6413 = vpow2.f32 %v4509_v3  ;;  %v4513_v9 = vmul.f32 1.442695, %v4502_v48 }
 0xaa6   :  { %v4492_v4 = vpop.xlane.xlu1 %4491  ;;  %v4489_v6 = vpop.xlane.xlu0 %4488 }
 0xaa7   :  { %v4503_v22 = vsub.f32 %v4243_v50, %v4489_v6  ;;  %v4504_v23 = vsub.f32 %v4319_v55, %v4492_v4 }
 0xaa8   :  { %v6410_v7 = vpop.eup %6409 }
 0xaa9   :  { %v4515_v15 = vmul.f32 1.442695, %v4503_v22  ;;  %v4523_v34 = vsel %vm1082_vm2, %v6410_v7, 0.0  ;;  %v4517_v18 = vmul.f32 1.442695, %v4504_v23 }
 0xaaa   :  { %v6412_v8 = vpop.eup %6411  ;;  %v4498_v17 = vpop.xlane.xlu1 %4497  ;;  %4524 = vadd.xlane.f32.xlu0 %v4523_v34 }
 0xaab   :  { %v4495_v46 = vpop.xlane.xlu0 %4494  ;;  %v4506_v16 = vsub.f32 %v4471_v14, %v4498_v17  ;;  %6415 = vpow2.f32 %v4515_v15  ;;  %v4529_v11 = vsel %vm1082_vm2, %v6412_v8, 0.0 }
 0xaac   :  { %v4505_v58 = vsub.f32 %v4395_v36, %v4495_v46  ;;  %6417 = vpow2.f32 %v4513_v9 }
 0xaad   :  { %v4521_v21 = vmul.f32 1.442695, %v4506_v16 }
 0xaae   :  { %v4519_v10 = vmul.f32 1.442695, %v4505_v58  ;;  %v6414_v49 = vpop.eup %6413  ;;  %4530 = vadd.xlane.f32.xlu0 %v4529_v11  ;;  %v3578_v55 = vpop.permute.xlu1 %3577 }
 0xaaf   :  { %v4526_v25 = vsel %vm1082_vm2, %v6414_v49, 0.0  ;;  %v3574_v43 = vpop.permute.xlu0 %3573 }
 0xab0   :  { %6419 = vpow2.f32 %v4519_v10  ;;  %4527 = vadd.xlane.f32.xlu1 %v4526_v25 }
 0xab1   :  { %6421 = vpow2.f32 %v4517_v18 }
 0xab2   :  { %6423 = vpow2.f32 %v4521_v21 }
 0xab5   :  { %v7390_v30 = vpop.eup %6415 }
 0xab6   :  { %v4535_v31 = vsel %vm1082_vm2, %v7390_v30, 0.0  ;;  %v6418_v33 = vpop.eup %6417 }
 0xab7   :  { %4536 = vadd.xlane.f32.xlu1 %v4535_v31  ;;  %v4532_v26 = vsel %vm1082_vm2, %v6418_v33, 0.0 }
 0xaba   :  { %v7394_v28 = vpop.eup %6419 }
 0xabb   :  { %v7396_v38 = vpop.eup %6421  ;;  %v4541_v27 = vsel %vm1082_vm2, %v7394_v28, 0.0  ;;  %4533 = vadd.xlane.f32.xlu1 %v4532_v26 }
 0xabc   :  { %v7401_v39 = vpop.eup %6423  ;;  %4542 = vadd.xlane.f32.xlu0 %v4541_v27  ;;  %v4538_v42 = vsel %vm1082_vm2, %v7396_v38, 0.0 }
 0xabd   :  { %v4544_v47 = vsel %vm1082_vm2, %v7401_v39, 0.0 }
 0xabf   :  { %4545 = vadd.xlane.f32.xlu1 %v4544_v47 }
 0xac0   :  { %4539 = vadd.xlane.f32.xlu0 %v4538_v42 }
 0xad0   :  { %3581 = vrot.lane.b32.xlu1 %v7231_v45, %s6578_s27 }
 0xad6   :  { %3585 = vrot.lane.b32.xlu0 %v7229_v44, %s6578_s27  ;;  %s6586_s27 = smov [#allocation10]  }
 0xb37   :  { %v4525_v50 = vpop.xlane.xlu0 %4524 }
 0xb38   :  { %6425 = vrcp.f32 %v4525_v50 }
 0xb3b   :  { %v4531_v56 = vpop.xlane.xlu0 %4530 }
 0xb3c   :  { %6427 = vrcp.f32 %v4531_v56 }
 0xb3d   :  { %v4528_v13 = vpop.xlane.xlu1 %4527 }
 0xb3e   :  { %6429 = vrcp.f32 %v4528_v13 }
 0xb42   :  { %v6426_v60 = vpop.eup %6425 }
 0xb43   :  { %v4555_v32 = vmul.f32 %v6426_v60, %v6410_v7 }
 0xb44   :  { %v4537_v36 = vpop.xlane.xlu1 %4536 }
 0xb45   :  { %6203 = vmatmul.mubr.msk.f32.vlgmr.msra.gmra.mrb[24].mxu0 %vm1082_vm2, %v4555_v32 }
 0xb46   :  { %v6428_v14 = vpop.eup %6427  ;;  %6211 = vmatpush3.msra.mxu0 %v3797_v5  ;;  %6212 = vmatprep.mubr.msk.f32.mxu0 %vm6581_vm1, %v6579_v19 }
 0xb47   :  { %v4557_v44 = vmul.f32 %v6428_v14, %v6412_v8  ;;  %6220 = vmatprep.subr.mxu0 %v6579_v19 }
 0xb48   :  { %v6430_v45 = vpop.eup %6429  ;;  %v4534_v61 = vpop.xlane.xlu1 %4533 }
 0xb49   :  { %v4556_v12 = vmul.f32 %v6430_v45, %v6414_v49  ;;  %v4543_v62 = vpop.xlane.xlu0 %4542  ;;  %6213 = vmatmul.mubr.msk.f32.vlgmr.msra.gmra.mrb[26].mxu0 %vm1082_vm2, %v4557_v44  ;;  %6431 = vrcp.f32 %v4534_v61 }
 0xb4a   :  { %6222 = vmatprep.mubr.msk.f32.mxu0 %vm6581_vm1, %v6579_v19  ;;  %6433 = vrcp.f32 %v4537_v36 }
 0xb4b   :  { %6208 = vmatmul.mubr.msk.f32.vlgmr.msra.gmra.mrb[32].mxu1 %vm1082_vm2, %v4556_v12 }
 0xb4c   :  { %6216 = vmatpush3.msra.mxu1 %v3798_v24  ;;  %6217 = vmatprep.mubr.msk.f32.mxu1 %vm6581_vm1, %v6579_v19  ;;  %v4546_v5 = vpop.xlane.xlu1 %4545 }
 0xb4d   :  { %v4540_v53 = vpop.xlane.xlu0 %4539  ;;  %6225 = vmatprep.subr.mxu1 %v6579_v19 }
 0xb4e   :  { %6435 = vrcp.f32 %v4540_v53 }
 0xb4f   :  { %6437 = vrcp.f32 %v4543_v62 }
 0xb50   :  { %v3582_v35 = vpop.permute.xlu1 %3581  ;;  %6439 = vrcp.f32 %v4546_v5 }
 0xb51   :  { %v3586_v54 = vpop.permute.xlu0 %3585  ;;  %v3663_v63 = vcombine.low %v3574_v43, %v3582_v35  ;;  %v3664_v0 = vcombine.high %v3574_v43, %v3582_v35 }
 0xb52   :  { %v3679_v40 = vcombine.low %v3578_v55, %v3586_v54  ;;  %v3680_v51 = vcombine.high %v3578_v55, %v3586_v54 }
 0xb53   :  { %v6432_v52 = vpop.eup %6431  ;;  %v3671_v1 = vrot.slane %v3663_v63, %v6775_v29  ;;  %v3678_v2 = vrot.slane %v3664_v0, %v6775_v29 }
 0xb54   :  { %v3687_v41 = vrot.slane %v3679_v40, %v6775_v29  ;;  %v3694_v20 = vrot.slane %v3680_v51, %v6775_v29  ;;  %v4558_v24 = vmul.f32 %v6432_v52, %v6418_v33  ;;  %v6434_v25 = vpop.eup %6433 }
 0xb55   :  { %v4559_v55 = vmul.f32 %v6434_v25, %v7390_v30 }
 0xb56   :  { %v3695_v3 = vcombine.low %v3671_v1, %v3687_v41  ;;  %v3696_v48 = vcombine.high %v3671_v1, %v3687_v41  ;;  %v3711_v4 = vcombine.low %v3678_v2, %v3694_v20  ;;  %v3712_v6 = vcombine.high %v3678_v2, %v3694_v20  ;;  %6218 = vmatmul.mubr.msk.f32.vlgmr.msra.gmra.mrb[34].mxu1 %vm1082_vm2, %v4558_v24 }
 0xb57   :  { %6227 = vmatprep.mubr.msk.f32.mxu1 %vm6581_vm1, %v6579_v19 }
 0xb58   :  { %v3703_v22 = vrot.slane %v3695_v3, %v6785_v37  ;;  %v3710_v7 = vrot.slane %v3696_v48, %v6785_v37  ;;  %v3719_v23 = vrot.slane %v3711_v4, %v6785_v37  ;;  %v3726_v15 = vrot.slane %v3712_v6, %v6785_v37  ;;  %v6436_v33 = vpop.eup %6435 }
 0xb59   :  { %v6438_v50 = vpop.eup %6437  ;;  %v4560_v56 = vmul.f32 %v6436_v33, %v7396_v38 }
 0xb5a   :  { %v3799_v34 = vcombine.low %v3703_v22, %v3710_v7  ;;  %v5883_v8 = vcombine.high %v3703_v22, %v3710_v7  ;;  %v3815_v9 = vcombine.low %v3719_v23, %v3726_v15  ;;  %v5884_v17 = vcombine.high %v3719_v23, %v3726_v15  ;;  %v6440_v13 = vpop.eup %6439 }
 0xb5b   :  { %v4561_v36 = vmul.f32 %v6438_v50, %v7394_v28  ;;  %v4562_v14 = vmul.f32 %v6440_v13, %v7401_v39 }
 0xb5c   :  { %v3806_v46 = vrot.slane %v3799_v34, %v6775_v29  ;;  %v3814_v16 = vrot.slane %v5883_v8, %v6775_v29  ;;  %v3822_v58 = vrot.slane %v3815_v9, %v6775_v29  ;;  %v3830_v18 = vrot.slane %v5884_v17, %v6775_v29 }
 0xb5e   :  { %v3831_v10 = vcombine.low %v3806_v46, %v3814_v16  ;;  %v3832_v11 = vcombine.high %v3806_v46, %v3814_v16  ;;  %v3847_v49 = vcombine.low %v3822_v58, %v3830_v18  ;;  %v3848_v21 = vcombine.high %v3822_v58, %v3830_v18 }
 0xb60   :  { %v3839_v31 = vrot.slane %v3831_v10, %v6785_v37  ;;  %v3855_v26 = vrot.slane %v3847_v49, %v6785_v37  ;;  %v3846_v27 = vrot.slane %v3832_v11, %v6785_v37  ;;  %v3862_v47 = vrot.slane %v3848_v21, %v6785_v37 }
 0xb62   :  { %v3863_v42 = vcombine.low %v3839_v31, %v3855_v26  ;;  %v3864_v43 = vcombine.high %v3839_v31, %v3855_v26  ;;  %v3865_v60 = vcombine.low %v3846_v27, %v3862_v47  ;;  %v3866_v32 = vcombine.high %v3846_v27, %v3862_v47 }
 0xb64   :  { %6221 = vmatpush3.msra.mxu0 %v3863_v42  ;;  %6226 = vmatpush3.msra.mxu1 %v3864_v43 }
 0xb65   :  { %6223 = vmatmul.mubr.msk.f32.vlgmr.msra.gmra.mrb[28].mxu0 %vm1082_vm2, %v4559_v55  ;;  %6228 = vmatmul.mubr.msk.f32.vlgmr.msra.gmra.mrb[36].mxu1 %vm1082_vm2, %v4560_v56 }
 0xb66   :  { %6230 = vmatprep.subr.mxu0 %v6579_v19  ;;  %6235 = vmatprep.subr.mxu1 %v6579_v19 }
 0xb67   :  { %6231 = vmatpush3.msra.mxu0 %v3865_v60  ;;  %6236 = vmatpush3.msra.mxu1 %v3866_v32 }
 0xb68   :  { %6232 = vmatprep.mubr.msk.f32.mxu0 %vm6581_vm1, %v6579_v19  ;;  %6237 = vmatprep.mubr.msk.f32.mxu1 %vm6581_vm1, %v6579_v19 }
 0xb69   :  { %6233 = vmatmul.mubr.msk.f32.vlgmr.msra.gmra.mrb[30].mxu0 %vm1082_vm2, %v4561_v36  ;;  %6238 = vmatmul.mubr.msk.f32.vlgmr.msra.gmra.mrb[38].mxu1 %vm1082_vm2, %v4562_v14 }
 0xc18   :  { %v4632_v30 = vpop.f32.mrb[24].mxu0 }
 0xc19   :  { %v6204_v38 = vpop.f32.mrb[25].mxu0 }
 0xc1c   :  { %v4778_v44 = vpop.f32.mrb[26].mxu0 }
 0xc1d   :  { %v5147_v45 = vcombine.low %v4632_v30, %v4778_v44  ;;  %v5148_v12 = vcombine.high %v4632_v30, %v4778_v44  ;;  %v6214_v28 = vpop.f32.mrb[27].mxu0 }
 0xc1e   :  { %v4705_v61 = vpop.f32.mrb[32].mxu1  ;;  %v2798_v28 = vld [vmem:[#allocation7 + $0x8] sm:$0xff] }
 0xc1f   :  { %v6209_v39 = vpop.f32.mrb[33].mxu1  ;;  %v5155_v54 = vrot.slane %v5147_v45, %v6775_v29  ;;  %v5162_v19 = vrot.slane %v5148_v12, %v6775_v29  ;;  %v2797_v12 = vld [vmem:[#allocation7] sm:$0xff] }
 0xc29   :  { %v4851_v62 = vpop.f32.mrb[34].mxu1 }
 0xc2a   :  { %v5163_v5 = vcombine.low %v4705_v61, %v4851_v62  ;;  %v5164_v53 = vcombine.high %v4705_v61, %v4851_v62  ;;  %v6219_v35 = vpop.f32.mrb[35].mxu1 }
 0xc2c   :  { %v5171_v63 = vrot.slane %v5163_v5, %v6775_v29  ;;  %v5178_v0 = vrot.slane %v5164_v53, %v6775_v29  ;;  %v6313_v53 = vpack.c.bf16 %v2798_v28, %v2797_v12  ;;  %v5577_v28 = vld [vmem:[#allocation8 + $0x18] sm:$0xff] }
 0xc2e   :  { %v5179_v40 = vcombine.low %v5155_v54, %v5171_v63  ;;  %v5180_v51 = vcombine.high %v5155_v54, %v5171_v63  ;;  %v5195_v52 = vcombine.low %v5162_v19, %v5178_v0  ;;  %v5196_v1 = vcombine.high %v5162_v19, %v5178_v0  ;;  %6314 = vmatprep.subr.bf16.mxu0 %v6313_v53  ;;  %v2799_v0 = vld [vmem:[#allocation7 + $0x10] sm:$0xff] }
 0xc2f   :  { %6316 = vmatpush3.bf16.msra.mxu0 %v6313_v53 }
 0xc30   :  { %v5187_v2 = vrot.slane %v5179_v40, %v6785_v37  ;;  %v5194_v41 = vrot.slane %v5180_v51, %v6785_v37  ;;  %v5203_v20 = vrot.slane %v5195_v52, %v6785_v37  ;;  %v5210_v24 = vrot.slane %v5196_v1, %v6785_v37  ;;  %v2800_v40 = vld [vmem:[#allocation7 + $0x18] sm:$0xff] }
 0xc32   :  { %v5283_v3 = vcombine.low %v5187_v2, %v5194_v41  ;;  %v5909_v48 = vcombine.high %v5187_v2, %v5194_v41  ;;  %v5299_v4 = vcombine.low %v5203_v20, %v5210_v24  ;;  %v5910_v6 = vcombine.high %v5203_v20, %v5210_v24 }
 0xc33   :  { %v6317_v41 = vpack.c.bf16 %v2800_v40, %v2799_v0 }
 0xc34   :  { %v5290_v22 = vrot.slane %v5283_v3, %v6775_v29  ;;  %v5298_v7 = vrot.slane %v5909_v48, %v6775_v29  ;;  %v5306_v23 = vrot.slane %v5299_v4, %v6775_v29  ;;  %v5314_v15 = vrot.slane %v5910_v6, %v6775_v29 }
 0xc35   :  { %6318 = vmatprep.subr.bf16.mxu0 %v6317_v41 }
 0xc36   :  { %v5315_v34 = vcombine.low %v5290_v22, %v5298_v7  ;;  %v5331_v8 = vcombine.low %v5306_v23, %v5314_v15  ;;  %v5316_v9 = vcombine.high %v5290_v22, %v5298_v7  ;;  %v5332_v17 = vcombine.high %v5306_v23, %v5314_v15  ;;  %6320 = vmatpush3.bf16.msra.mxu0 %v6317_v41 }
 0xc38   :  { %v4924_v46 = vpop.f32.mrb[28].mxu0  ;;  %v4997_v16 = vpop.f32.mrb[36].mxu1  ;;  %v7474_v58 = vrot.slane %v5315_v34, %v6785_v37  ;;  %v7477_v18 = vrot.slane %v5331_v8, %v6785_v37  ;;  %v5330_v10 = vrot.slane %v5316_v9, %v6785_v37  ;;  %v5346_v11 = vrot.slane %v5332_v17, %v6785_v37 }
 0xc39   :  { %v6224_v49 = vpop.f32.mrb[29].mxu0  ;;  %v6229_v21 = vpop.f32.mrb[37].mxu1 }
 0xc3a   :  { %v5348_v25 = vcombine.high %v7474_v58, %v7477_v18  ;;  %v5347_v31 = vcombine.low %v7474_v58, %v7477_v18  ;;  %v5349_v33 = vcombine.low %v5330_v10, %v5346_v11  ;;  %v5350_v26 = vcombine.high %v5330_v10, %v5346_v11 }
 0xc3c   :  { %v5070_v27 = vpop.f32.mrb[30].mxu0  ;;  %v5143_v47 = vpop.f32.mrb[38].mxu1  ;;  %5421 = vrot.lane.b32.xlu1 %v5348_v25, %s6572_s22  ;;  %v5913_v25 = vld [vmem:[%s7597_s8 + $0x3] ss:$0 sm:$0xff] }
 0xc3d   :  { %v5215_v42 = vcombine.low %v4924_v46, %v5070_v27  ;;  %v5216_v43 = vcombine.high %v4924_v46, %v5070_v27  ;;  %v5231_v50 = vcombine.low %v4997_v16, %v5143_v47  ;;  %v5232_v55 = vcombine.high %v4997_v16, %v5143_v47  ;;  %v6234_v56 = vpop.f32.mrb[31].mxu0  ;;  %v6239_v13 = vpop.f32.mrb[39].mxu1 }
 0xc3f   :  { %v5223_v60 = vrot.slane %v5215_v42, %v6775_v29  ;;  %v5230_v32 = vrot.slane %v5216_v43, %v6775_v29  ;;  %v5239_v36 = vrot.slane %v5231_v50, %v6775_v29  ;;  %v5246_v14 = vrot.slane %v5232_v55, %v6775_v29 }
 0xc40   :  { %5429 = vrot.lane.b32.xlu1 %v5349_v33, %s6584_s29 }
 0xc41   :  { %v5247_v30 = vcombine.low %v5223_v60, %v5239_v36  ;;  %v5248_v38 = vcombine.high %v5223_v60, %v5239_v36  ;;  %v5263_v44 = vcombine.low %v5230_v32, %v5246_v14  ;;  %v5264_v45 = vcombine.high %v5230_v32, %v5246_v14 }
 0xc43   :  { %v5255_v61 = vrot.slane %v5247_v30, %v6785_v37  ;;  %v5262_v39 = vrot.slane %v5248_v38, %v6785_v37  ;;  %v5271_v62 = vrot.slane %v5263_v44, %v6785_v37  ;;  %v5278_v5 = vrot.slane %v5264_v45, %v6785_v37  ;;  %v5575_v44 = vld [vmem:[#allocation8 + $0x8] sm:$0xff]  ;;  %v5576_v45 = vld [vmem:[#allocation8 + $0x10] sm:$0xff] }
 0xc44   :  { %5437 = vrot.lane.b32.xlu1 %v5350_v26, %s6585_s30 }
 0xc45   :  { %v5351_v35 = vcombine.low %v5255_v61, %v5262_v39  ;;  %v5911_v54 = vcombine.high %v5255_v61, %v5262_v39  ;;  %v5367_v19 = vcombine.low %v5271_v62, %v5278_v5  ;;  %v5912_v63 = vcombine.high %v5271_v62, %v5278_v5  ;;  %v5665_v39 = vld [vmem:[%s7596_s7] sm:$0xff]  ;;  %v5666_v62 = vld [vmem:[%s7596_s7 + $0x8] sm:$0xff]  ;;  %v5667_v5 = vld [vmem:[%s7596_s7 + $0x10] sm:$0xff] }
 0xc46   :  { %v6325_v61 = vpack.c.bf16 %v5577_v28, %v5576_v45  ;;  %v6329_v53 = vpack.c.bf16 %v5666_v62, %v5665_v39  ;;  %v5925_v62 = vld [vmem:[%s7597_s8 + $0xb] ss:$0 sm:$0xff] }
 0xc47   :  { %v5358_v51 = vrot.slane %v5351_v35, %v6775_v29  ;;  %v5366_v52 = vrot.slane %v5911_v54, %v6775_v29  ;;  %v5374_v1 = vrot.slane %v5367_v19, %v6775_v29  ;;  %v5382_v2 = vrot.slane %v5912_v63, %v6775_v29  ;;  %v5668_v35 = vld [vmem:[%s7596_s7 + $0x18] sm:$0xff]  ;;  %v5669_v19 = vld [vmem:[%s7596_s7 + $0x20] sm:$0xff]  ;;  %v5670_v63 = vld [vmem:[%s7596_s7 + $0x28] sm:$0xff] }
 0xc48   :  { %v6333_v54 = vpack.c.bf16 %v5668_v35, %v5667_v5  ;;  %6330 = vmatprep.subr.bf16.mxu0 %v6329_v53  ;;  %v6337_v0 = vpack.c.bf16 %v5670_v63, %v5669_v19 }
 0xc49   :  { %v5383_v20 = vcombine.low %v5358_v51, %v5366_v52  ;;  %v5399_v24 = vcombine.low %v5374_v1, %v5382_v2  ;;  %v5384_v3 = vcombine.high %v5358_v51, %v5366_v52  ;;  %v5400_v48 = vcombine.high %v5374_v1, %v5382_v2 }
 0xc4b   :  { %v5391_v4 = vrot.slane %v5383_v20, %v6785_v37  ;;  %v5407_v6 = vrot.slane %v5399_v24, %v6785_v37  ;;  %v5398_v22 = vrot.slane %v5384_v3, %v6785_v37  ;;  %v5414_v7 = vrot.slane %v5400_v48, %v6785_v37  ;;  %v5916_v24 = vld [vmem:[%s7597_s8 + $0x8] ss:$0 sm:$0xff] }
 0xc4d   :  { %v5416_v23 = vcombine.high %v5391_v4, %v5407_v6  ;;  %v5415_v15 = vcombine.low %v5391_v4, %v5407_v6  ;;  %v5417_v34 = vcombine.low %v5398_v22, %v5414_v7  ;;  %v5418_v29 = vcombine.high %v5398_v22, %v5414_v7  ;;  %v5917_v6 = vld [vmem:[%s7597_s8 + $0x9] ss:$0 sm:$0xff] }
 0xc4f   :  { %5423 = vrot.lane.b32.xlu0 %v5416_v23, %s6572_s22 }
 0xc53   :  { %5431 = vrot.lane.b32.xlu0 %v5417_v34, %s6584_s29  ;;  %v5671_v34 = vld [vmem:[%s7596_s7 + $0x30] sm:$0xff]  ;;  %s5806_s29 = sshll.u32 %s6586_s27, 4  ;;  %s5807_s29 = int_to_ptr.vmem [resolvable:$true] %s5806_s29 }
 0xc54   :  { %p6544_p5 = scmp.lt.s32.totalorder %s5807_s29, %s5807_s29 }
 0xc57   :  { %5439 = vrot.lane.b32.xlu0 %v5418_v29, %s6585_s30  ;;  %v5672_v29 = vld [vmem:[%s7596_s7 + $0x38] sm:$0xff]  ;;  %s6539_s30 = scalar_lea.vmem %s5807_s29, 256 }
 0xc58   :  { %p6540_p4 = scmp.ne.s32.totalorder %s5807_s29, %s6539_s30  ;;  %p6545_p6 = scmp.lt.s32.totalorder %s6539_s30, %s6539_s30 }
 0xc5a   :  { %p6546_p7 = por %p6545_p6, %p6544_p5 }
 0xc5c   :  { %p6547_p8 = pnand %p6546_p7, %p6540_p4 }
 0xcae   :  { %v5422_v8 = vpop.permute.xlu1 %5421 }
 0xcaf   :  { %v5443_v17 = vsel %vm1082_vm2, %v5347_v31, %v5422_v8  ;;  %v6341_v8 = vpack.c.bf16 %v5672_v29, %v5671_v34 }
 0xcb2   :  { %v5430_v9 = vpop.permute.xlu1 %5429 }
 0xcb3   :  { %v5445_v46 = vsel %vm2661_vm3, %v5443_v17, %v5430_v9  ;;  %v5918_v9 = vld [vmem:[%s7597_s8 + $0x4] ss:$0 sm:$0xff] }
 0xcb6   :  { %v5438_v16 = vpop.permute.xlu1 %5437 }
 0xcb7   :  { %v5447_v37 = vsel %vm2664_vm4, %v5445_v46, %v5438_v16 }
 0xcb8   :  { %6248 = vmatprep.mubr.msk.f32.mxu0 %vm116_vm0, %v5447_v37 }
 0xcc1   :  { %v5424_v58 = vpop.permute.xlu0 %5423 }
 0xcc2   :  { %v5444_v10 = vsel %vm1082_vm2, %v5415_v15, %v5424_v58 }
 0xcc5   :  { %v5432_v18 = vpop.permute.xlu0 %5431 }
 0xcc6   :  { %v5446_v11 = vsel %vm2661_vm3, %v5444_v10, %v5432_v18  ;;  %v5921_v10 = vld [vmem:[%s7597_s8 + $0x5] ss:$0 sm:$0xff] }
 0xcc9   :  { %v5440_v49 = vpop.permute.xlu0 %5439 }
 0xcca   :  { %v5448_v21 = vsel %vm2664_vm4, %v5446_v11, %v5440_v49 }
 0xccb   :  { %6249 = vmatmul.mubr.msk.f32.vlgmr.msra.gmra.mrb[32].mxu0 %vm116_vm0, %v5448_v21 }
 0xccc   :  { %6332 = vmatpush3.bf16.msra.mxu0 %v6329_v53 }
 0xccd   :  { %6334 = vmatprep.subr.bf16.mxu0 %v6333_v54 }
 0xcd0   :  { %6336 = vmatpush3.bf16.msra.mxu0 %v6333_v54 }
 0xcd1   :  { %6338 = vmatprep.subr.bf16.mxu0 %v6337_v0 }
 0xcd4   :  { %6340 = vmatpush3.bf16.msra.mxu0 %v6337_v0 }
 0xcd5   :  { %6342 = vmatprep.subr.bf16.mxu0 %v6341_v8 }
 0xcd8   :  { %6344 = vmatpush3.bf16.msra.mxu0 %v6341_v8 }
 0xd9e   :  { %v6250_v31 = vpop.f32.mrb[32].mxu0 }
 0xd9f   :  { %v5531_v33 = vadd.f32 %v6250_v31, %v5913_v25  ;;  %v5525_v26 = vpop.f32.mrb[33].mxu0 }
 0xda0   :  { %v5526_v27 = vadd.f32 %v5913_v25, %v5525_v26 }
 0xda1   :  { %v5535_v47 = vadd.f32 %v5531_v33, %v7163_v59 }
 0xda2   :  { %v5534_v42 = vadd.f32 %v5526_v27, %v7161_v57  ;;  %v5574_v57 = vld [vmem:[#allocation8] sm:$0xff] }
 0xda3   :  { %v5539_v43 = vsel %vm116_vm0, %v5535_v47, 0.0  ;;  %v6321_v12 = vpack.c.bf16 %v5575_v44, %v5574_v57 }
 0xda4   :  { %5540 = vadd.xlane.f32.xlu0 %v5539_v43  ;;  %v5536_v50 = vsel %vm116_vm0, %v5534_v42, 0.0 }
 0xda5   :  { %5537 = vadd.xlane.f32.xlu1 %v5536_v50  ;;  %6322 = vmatprep.subr.bf16.mxu1 %v6321_v12 }
 0xda6   :  { %6324 = vmatpush3.bf16.msra.mxu1 %v6321_v12  ;;  %v5924_v12 = vld [vmem:[%s7597_s8 + $0xa] ss:$0 sm:$0xff] }
 0xda7   :  { %6326 = vmatprep.subr.bf16.mxu1 %v6325_v61 }
 0xdaa   :  { %6328 = vmatpush3.bf16.msra.mxu1 %v6325_v61 }
 0xe31   :  { %v5541_v55 = vpop.xlane.xlu0 %5540 }
 0xe32   :  { %v5543_v56 = vmul.f32 0.03125, %v5541_v55  ;;  %v5538_v13 = vpop.xlane.xlu1 %5537 }
 0xe33   :  { %v5542_v60 = vmul.f32 0.03125, %v5538_v13 }
 0xe34   :  { %v5545_v32 = vsub.f32 %v5535_v47, %v5543_v56 }
 0xe35   :  { %v5544_v36 = vsub.f32 %v5534_v42, %v5542_v60 }
 0xe36   :  { %v5547_v14 = vmul.f32 %v5545_v32, %v5545_v32 }
 0xe37   :  { %v5546_v30 = vmul.f32 %v5544_v36, %v5544_v36 }
 0xe38   :  { %v5551_v38 = vsel %vm116_vm0, %v5547_v14, 0.0 }
 0xe39   :  { %5552 = vadd.xlane.f32.xlu1 %v5551_v38  ;;  %v5548_v59 = vsel %vm116_vm0, %v5546_v30, 0.0 }
 0xe3a   :  { %5549 = vadd.xlane.f32.xlu0 %v5548_v59 }
 0xec6   :  { %v5553_v40 = vpop.xlane.xlu1 %5552 }
 0xec7   :  { %v5555_v51 = vmul.f32 0.03125, %v5553_v40  ;;  %v5550_v52 = vpop.xlane.xlu0 %5549 }
 0xec8   :  { %v5554_v1 = vmul.f32 0.03125, %v5550_v52 }
 0xec9   :  { %v5557_v2 = vadd.f32 1e-05, %v5555_v51 }
 0xeca   :  { %v5556_v41 = vadd.f32 1e-05, %v5554_v1 }
 0xecb   :  { %6441 = vrsqrt.f32 %v5557_v2 }
 0xecc   :  { %6443 = vrsqrt.f32 %v5556_v41 }
 0xed5   :  { %v6442_v20 = vpop.eup %6441 }
 0xed6   :  { %v6444_v3 = vpop.eup %6443  ;;  %v5561_v48 = vmul.f32 %v6442_v20, %v5545_v32 }
 0xed7   :  { %v5560_v4 = vmul.f32 %v6444_v3, %v5544_v36 }
 0xed8   :  { %v5567_v22 = vmul.f32 %v5916_v24, %v5561_v48 }
 0xed9   :  { %v5566_v7 = vmul.f32 %v5916_v24, %v5560_v4 }
 0xeda   :  { %v5573_v15 = vadd.f32 %v5917_v6, %v5567_v22 }
 0xedb   :  { %v5572_v23 = vadd.f32 %v5917_v6, %v5566_v7 }
 0xedd   :  { %6259 = vmatprep.mubr.msk.f32.mxu1 %vm116_vm0, %v5572_v23 }
 0xede   :  { %6260 = vmatmul.mubr.msk.f32.vlgmr.msra.gmra.mrb[40].mxu1 %vm116_vm0, %v5573_v15 }
 0xfb1   :  { %v6261_v17 = vpop.f32.mrb[40].mxu1 }
 0xfb2   :  { %v5660_v46 = vadd.f32 %v6261_v17, %v5918_v9  ;;  %v5654_v16 = vpop.f32.mrb[41].mxu1 }
 0xfb3   :  { %v5655_v37 = vadd.f32 %v5918_v9, %v5654_v16 }
 0xfb4   :  { %v5664_v18 = vmax.f32 %v5660_v46, 0.0 }
 0xfb5   :  { %v5663_v58 = vmax.f32 %v5655_v37, 0.0 }
 0xfb7   :  { %6278 = vmatprep.mubr.msk.f32.mxu0 %vm5677_vm5, %v5663_v58 }
 0xfb8   :  { %6279 = vmatmul.mubr.msk.f32.vlgmr.msra.gmra.mrb[34].mxu0 %vm5677_vm5, %v5664_v18 }
0x108b   :  { %v6280_v11 = vpop.f32.mrb[34].mxu0 }
0x108c   :  { %v5756_v49 = vadd.f32 %v6280_v11, %v5921_v10  ;;  %v5750_v21 = vpop.f32.mrb[35].mxu0 }
0x108d   :  { %v5751_v25 = vadd.f32 %v5921_v10, %v5750_v21 }
0x108e   :  { %v5760_v31 = vadd.f32 %v5756_v49, %v5573_v15 }
0x108f   :  { %v5759_v33 = vadd.f32 %v5751_v25, %v5572_v23 }
0x1090   :  { %v5764_v26 = vsel %vm116_vm0, %v5760_v31, 0.0 }
0x1091   :  { %5765 = vadd.xlane.f32.xlu1 %v5764_v26  ;;  %v5761_v27 = vsel %vm116_vm0, %v5759_v33, 0.0 }
0x1092   :  { %5762 = vadd.xlane.f32.xlu0 %v5761_v27 }
0x111e   :  { %v5766_v47 = vpop.xlane.xlu1 %5765 }
0x111f   :  { %v5768_v42 = vmul.f32 0.03125, %v5766_v47  ;;  %v5763_v43 = vpop.xlane.xlu0 %5762 }
0x1120   :  { %v5767_v50 = vmul.f32 0.03125, %v5763_v43 }
0x1121   :  { %v5770_v55 = vsub.f32 %v5760_v31, %v5768_v42 }
0x1122   :  { %v5769_v56 = vsub.f32 %v5759_v33, %v5767_v50 }
0x1123   :  { %v5772_v13 = vmul.f32 %v5770_v55, %v5770_v55 }
0x1124   :  { %v5771_v60 = vmul.f32 %v5769_v56, %v5769_v56 }
0x1125   :  { %v5776_v32 = vsel %vm116_vm0, %v5772_v13, 0.0 }
0x1126   :  { %5777 = vadd.xlane.f32.xlu1 %v5776_v32  ;;  %v5773_v36 = vsel %vm116_vm0, %v5771_v60, 0.0 }
0x1127   :  { %5774 = vadd.xlane.f32.xlu0 %v5773_v36 }
0x11b3   :  { %v5778_v14 = vpop.xlane.xlu1 %5777 }
0x11b4   :  { %v5780_v30 = vmul.f32 0.03125, %v5778_v14  ;;  %v5775_v38 = vpop.xlane.xlu0 %5774 }
0x11b5   :  { %v5779_v59 = vmul.f32 0.03125, %v5775_v38 }
0x11b6   :  { %v5782_v57 = vadd.f32 1e-05, %v5780_v30 }
0x11b7   :  { %v5781_v44 = vadd.f32 1e-05, %v5779_v59 }
0x11b8   :  { %6445 = vrsqrt.f32 %v5782_v57 }
0x11b9   :  { %6447 = vrsqrt.f32 %v5781_v44 }
0x11c2   :  { %v6446_v45 = vpop.eup %6445 }
0x11c3   :  { %v6448_v28 = vpop.eup %6447  ;;  %v5786_v61 = vmul.f32 %v6446_v45, %v5770_v55 }
0x11c4   :  { %v5785_v39 = vmul.f32 %v6448_v28, %v5769_v56 }
0x11c5   :  { %v5792_v5 = vmul.f32 %v5924_v12, %v5786_v61 }
0x11c6   :  { %v5791_v53 = vmul.f32 %v5924_v12, %v5785_v39 }
0x11c7   :  { %v5798_v35 = vadd.f32 %v5925_v62, %v5792_v5 }
0x11c8   :  { %v5797_v54 = vadd.f32 %v5925_v62, %v5791_v53 }
0x11c9   :  { %5800 = vst.msk [vmem:[#allocation10 + $0x8] sm:$0xff] %vm116_vm0, %v5798_v35 }
0x11ca   :  { %5799 = vst.msk [vmem:[#allocation10] sm:$0xff] %vm116_vm0, %v5797_v54 }
0x11cb   :  { %6550 = shalt.err (!%p6547_p8)
}
0x11cc   :  { %s6551_s5 = scalar_lea.hbm %s7598_s9, 256 }
0x11cd   :  { %p6552_p9 = scmp.ne.s32.totalorder %s7598_s9, %s6551_s5  ;;  %p6555_p10 = scmp.lt.u32.totalorder %s6551_s5, %s7598_s9 }
0x11cf   :  { %p6557_p11 = pnand %p6555_p10, %p6552_p9 }
0x11d1   :  { %6560 = shalt.err (!%p6557_p11)
}
0x11d2   :  { %5812 = dma.vmem_to_hbm [thread:$0]  %s5807_s29, 256, %s7598_s9, [#allocation4], %s6571_s21, %s6571_s21, %s6572_s22  }
0x11d3   :  { %6567 = dma.done.wait [#allocation4], 256  }
0x11d4   :  { %6568 = vsyncadd [#allocation4], 4294967040 }
0x11d5   :  { %5816 = vsyncpa [#allocation3], 1 }
0x11d6   :  { %5817 = vsyncpa [#allocation6], 1 }
0x11d7   :  { %5818 = vsyncpa [#allocation9], 1 }
0x11d8   :  { %5819 = vsyncpa [#allocation4], 1 }

</bundles_post_ra>
